<compile_context>
chip_gen: v6e
topology: v6e:2x2x1
jax: 0.10.0
libtpu: 0.0.40
codegen_flags: <defaults>
</compile_context>

<pallas_src>
import functools

import jax
import jax.numpy as jnp
from jax import lax
from jax.experimental import pallas as pl
from jax.experimental.pallas import tpu as pltpu


# --------------------------------------------------------------------------
# Fused forward kernel: one batch tile of `tb` images per grid step.
#   x_ref   : (24*tb, 140)   H-unfolded input, row = oh*tb + b, lane = di*28+iw
#   t1_ref  : (140, 768)     conv1 banded weights, col = r*256 + co*8 + p
#   b1_ref  : (1, 256)       conv1 bias repeated 8x per channel
#   t2_ref  : (5, 256, 256)  conv2 banded weights, col = r2*128 + co2*2 + pw2
#   b2_ref  : (1, 128)       conv2 bias repeated 2x per channel
#   w1p_ref : (256, n_pad)   fc1 weights, row = h2*128 + co2*2 + pw2, N padded
#   bf1_ref : (1, n_pad)
#   w2p_ref : (n_pad, 128)   fc2 weights, K padded n->n_pad, N padded 10->128
#   bf2_ref : (1, 128)
#   out_ref : (tb, 128)      lane-dense output tile
# --------------------------------------------------------------------------
def _fused_net_kernel(x_ref, t1_ref, b1_ref, t2_ref, b2_ref,
                      w1p_ref, bf1_ref, w2p_ref, bf2_ref, out_ref, *, tb):
    f32 = jnp.float32

    # ---- conv1: ONE banded matmul; W-pool phases live in the N dimension ----
    y = jnp.dot(x_ref[...], t1_ref[...],
                preferred_element_type=f32)                    # (24*tb, 768)
    yw = jnp.maximum(jnp.maximum(y[:, 0:256], y[:, 256:512]),
                     y[:, 512:768])                            # W-pool (24*tb,256)
    y4 = yw.reshape(8, 3, tb, 256)                             # oh = 3*q + s
    yh = jnp.maximum(jnp.maximum(y4[:, 0], y4[:, 1]), y4[:, 2])  # H-pool (8,tb,256)
    p1 = jnp.maximum(yh.reshape(8 * tb, 256) + b1_ref[...], 0.0)  # rows = q*tb+b

    # ---- conv2: 5 banded matmuls (kernel row di); W-pool phases in N ----
    acc = jnp.dot(p1[0:4 * tb, :], t2_ref[0],
                  preferred_element_type=f32)                  # (4*tb, 256)
    for di in range(1, 5):
        acc = acc + jnp.dot(p1[di * tb:(di + 4) * tb, :], t2_ref[di],
                            preferred_element_type=f32)
    zw = jnp.maximum(acc[:, 0:128], acc[:, 128:256])           # W-pool (4*tb,128)
    z4 = zw.reshape(2, 2, tb, 128)                             # oh2 = 2*h2 + s
    zh = jnp.maximum(z4[:, 0], z4[:, 1])                       # H-pool (2,tb,128)
    p2 = jnp.maximum(zh.reshape(2 * tb, 128) + b2_ref[...], 0.0)

    # ---- fc1 + relu: lane-concat the two h2 groups -> single K=256 matmul ----
    feat = jnp.concatenate([p2[0:tb, :], p2[tb:2 * tb, :]], axis=1)  # (tb, 256)
    h = jnp.maximum(jnp.dot(feat, w1p_ref[...], preferred_element_type=f32)
                    + bf1_ref[...], 0.0)                       # (tb, n_pad)

    # ---- fc2 (output padded to 128 lanes -> dense, unmasked store) ----
    out = jnp.dot(h, w2p_ref[...], preferred_element_type=f32) + bf2_ref[...]
    out_ref[...] = out.astype(out_ref.dtype)


# --------------------------------------------------------------------------
# One-time weight packing (done OUTSIDE the jitted forward).
# --------------------------------------------------------------------------
def prepare_params(params):
    f32 = jnp.float32
    n = params["fc1_w"].shape[0]
    n_pad = ((n + 127) // 128) * 128

    # conv1 -> T1[di*28 + iw, r*256 + co*8 + p] = w1[co, di, iw - 3p - r]
    w1 = params["conv1_w"].astype(f32)[:, 0]                   # (32, 5, 5)
    di = jnp.arange(5)[:, None, None]
    iw = jnp.arange(28)[None, :, None]
    col = jnp.arange(768)[None, None, :]
    r, co, p = col // 256, (col % 256) // 8, col % 8
    dj = iw - 3 * p - r
    valid = (dj >= 0) & (dj <= 4)
    t1 = jnp.where(valid, w1[co, di, jnp.clip(dj, 0, 4)], 0.0).reshape(140, 768)
    b1 = jnp.repeat(params["conv1_b"].astype(f32), 8).reshape(1, 256)

    # conv2 -> T2[di][cin*8 + w, r2*128 + co2*2 + pw2] = w2[co2,cin,di, w-2*pw2-r2]
    w2 = params["conv2_w"].astype(f32)                         # (64, 32, 5, 5)
    k = jnp.arange(256)[:, None]
    cin, pw = k // 8, k % 8
    col2 = jnp.arange(256)[None, :]
    r2, co2, pw2 = col2 // 128, (col2 % 128) // 2, col2 % 2
    dj2 = pw - 2 * pw2 - r2
    valid2 = (dj2 >= 0) & (dj2 <= 4)
    t2_list = []
    for d in range(5):
        t2_list.append(jnp.where(valid2, w2[co2, cin, d, jnp.clip(dj2, 0, 4)],
                                 0.0))
    t2 = jnp.stack(t2_list)                                    # (5, 256, 256)
    b2 = jnp.repeat(params["conv2_b"].astype(f32), 2).reshape(1, 128)

    # fc1: PyTorch flatten order is (co2, h2, pw2); kernel feature lane is
    # h2*128 + co2*2 + pw2.  Single (256, n_pad) matrix, N zero-padded.
    w1full = (params["fc1_w"].astype(f32).reshape(n, 64, 2, 2)
              .transpose(2, 1, 3, 0).reshape(256, n))
    w1p = jnp.pad(w1full, ((0, 0), (0, n_pad - n)))
    bf1 = jnp.pad(params["fc1_b"].astype(f32), (0, n_pad - n)).reshape(1, n_pad)

    # fc2: transpose, zero-pad K (n -> n_pad) and N (10 -> 128).
    w2p = jnp.pad(params["fc2_w"].astype(f32).T, ((0, n_pad - n), (0, 118)))
    bf2 = jnp.pad(params["fc2_b"].astype(f32), (0, 118)).reshape(1, 128)

    return {"t1": t1, "b1": b1, "t2": t2, "b2": b2,
            "w1p": w1p, "bf1": bf1, "w2p": w2p, "bf2": bf2}


# --------------------------------------------------------------------------
# Forward pass: one fused pallas_call gridded over batch tiles.
# --------------------------------------------------------------------------
def net_forward(x_nchw, prepped, *, batch_tile=None):
    B = x_nchw.shape[0]
    n_pad = prepped["w1p"].shape[1]

    if batch_tile is None:
        # Fill the MXU M dimension (tb up to 128) while keeping grid_b >= 2
        # when the batch allows it (v7x megacore: 2 TensorCores share the
        # single "parallel" grid axis).
        tb = min(128, max(8, (B // 2) // 8 * 8))
    else:
        tb = batch_tile
    assert tb % 8 == 0 and tb >= 8
    grid_b = pl.cdiv(B, tb)
    b_pad = grid_b * tb

    x = x_nchw.reshape(B, 28, 28).astype(jnp.float32)
    if b_pad != B:
        x = jnp.pad(x, ((0, b_pad - B), (0, 0), (0, 0)))
    # Single tiny prep op: H-unfold (fold the 5 conv1 kernel rows into K) and
    # the (b, oh) -> (oh, b) row reorder, done together on the raw input.
    xu = jnp.stack([x[:, d:d + 24, :] for d in range(5)], axis=2)  # (b_pad,24,5,28)
    xt = (xu.reshape(grid_b, tb, 24, 140).transpose(0, 2, 1, 3)
          .reshape(grid_b * 24 * tb, 140))

    kernel = functools.partial(_fused_net_kernel, tb=tb)
    out = pl.pallas_call(
        kernel,
        out_shape=jax.ShapeDtypeStruct((b_pad, 128), jnp.float32),
        grid=(grid_b,),
        in_specs=[
            pl.BlockSpec((24 * tb, 140), lambda i: (i, 0)),
            pl.BlockSpec((140, 768), lambda i: (0, 0)),
            pl.BlockSpec((1, 256), lambda i: (0, 0)),
            pl.BlockSpec((5, 256, 256), lambda i: (0, 0, 0)),
            pl.BlockSpec((1, 128), lambda i: (0, 0)),
            pl.BlockSpec((256, n_pad), lambda i: (0, 0)),
            pl.BlockSpec((1, n_pad), lambda i: (0, 0)),
            pl.BlockSpec((n_pad, 128), lambda i: (0, 0)),
            pl.BlockSpec((1, 128), lambda i: (0, 0)),
        ],
        out_specs=pl.BlockSpec((tb, 128), lambda i: (i, 0)),
        compiler_params=pltpu.CompilerParams(
            dimension_semantics=("parallel",),
            vmem_limit_bytes=48 * 1024 * 1024),
    )(xt, prepped["t1"], prepped["b1"], prepped["t2"], prepped["b2"],
      prepped["w1p"], prepped["bf1"], prepped["w2p"], prepped["bf2"])

    return out[:B, :10]


# --------------------------------------------------------------------------
# Pure-JAX reference (independent math path) for the correctness check.
# --------------------------------------------------------------------------
def reference_forward(x_nchw, params):
    B = x_nchw.shape[0]
    x = jnp.transpose(x_nchw, (0, 2, 3, 1))
    w1 = jnp.transpose(params["conv1_w"], (2, 3, 1, 0))   # HWIO
    dn1 = lax.conv_dimension_numbers(x.shape, w1.shape, ("NHWC", "HWIO", "NHWC"))
    y = lax.conv_general_dilated(x, w1, (1, 1), "VALID", dimension_numbers=dn1,
                                 precision=lax.Precision.HIGHEST) + params["conv1_b"]
    y = jnp.maximum(lax.reduce_window(y, -jnp.inf, lax.max,
                                      (1, 3, 3, 1), (1, 3, 3, 1), "VALID"), 0.0)
    w2 = jnp.transpose(params["conv2_w"], (2, 3, 1, 0))
    dn2 = lax.conv_dimension_numbers(y.shape, w2.shape, ("NHWC", "HWIO", "NHWC"))
    y = lax.conv_general_dilated(y, w2, (1, 1), "VALID", dimension_numbers=dn2,
                                 precision=lax.Precision.HIGHEST) + params["conv2_b"]
    y = jnp.maximum(lax.reduce_window(y, -jnp.inf, lax.max,
                                      (1, 2, 2, 1), (1, 2, 2, 1), "VALID"), 0.0)
    feat = jnp.transpose(y, (0, 3, 1, 2)).reshape(B, 256)
    h = jnp.maximum(feat @ params["fc1_w"].T + params["fc1_b"], 0.0)
    return h @ params["fc2_w"].T + params["fc2_b"]


# --------------------------------------------------------------------------
# Deterministic parameter init (shapes from Net.__init__, n=200)
# --------------------------------------------------------------------------
def make_params(n=200):
    ks = jax.random.split(jax.random.PRNGKey(42), 8)

    def init(k, shape, fan_in):
        return jax.random.normal(k, shape, dtype=jnp.float32) / jnp.sqrt(fan_in)

    return {
        "conv1_w": init(ks[0], (32, 1, 5, 5), 25.0),
        "conv1_b": init(ks[1], (32,), 25.0),
        "conv2_w": init(ks[2], (64, 32, 5, 5), 800.0),
        "conv2_b": init(ks[3], (64,), 800.0),
        "fc1_w": init(ks[4], (n, 256), 256.0),
        "fc1_b": init(ks[5], (n,), 256.0),
        "fc2_w": init(ks[6], (10, n), float(n)),
        "fc2_b": init(ks[7], (10,), float(n)),
    }


if __name__ == "__main__":
    # 256 = 64 * 2 * 2 in the flatten implies a 28x28 single-channel input.
    key = jax.random.PRNGKey(0)
    params = make_params(n=200)
    prepped = prepare_params(params)          # one-time weight packing
    fwd = jax.jit(net_forward)

    # Primary small-shape check (batch = 2).
    x = jax.random.normal(key, (2, 1, 28, 28), dtype=jnp.float32)
    out = jax.block_until_ready(fwd(x, prepped))
    ref = reference_forward(x, params)
    assert out.shape == (2, 10)
    assert bool(jnp.all(jnp.isfinite(out)))
    max_err = float(jnp.max(jnp.abs(out - ref)))
    assert bool(jnp.allclose(out, ref, atol=2e-3, rtol=2e-3)), (
        "mismatch vs reference (B=2)", max_err)

    # Secondary check: non-multiple batch -> exercises padding + grid_b > 1.
    x2 = jax.random.normal(jax.random.PRNGKey(1), (35, 1, 28, 28),
                           dtype=jnp.float32)
    out2 = jax.block_until_ready(fwd(x2, prepped))
    ref2 = reference_forward(x2, params)
    assert out2.shape == (35, 10)
    max_err2 = float(jnp.max(jnp.abs(out2 - ref2)))
    assert bool(jnp.allclose(out2, ref2, atol=2e-3, rtol=2e-3)), (
        "mismatch vs reference (B=35)", max_err2)

    print("KERNEL_OK")
</pallas_src>

<mosaic_0001>
module attributes {stable_mosaic.version = 11 : i64} {
  func.func @_fused_net_kernel(%arg0: i32, %arg1: memref<192x140xf32, #tpu.memory_space<vmem>>, %arg2: memref<140x768xf32, #tpu.memory_space<vmem>>, %arg3: memref<1x256xf32, #tpu.memory_space<vmem>>, %arg4: memref<5x256x256xf32, #tpu.memory_space<vmem>>, %arg5: memref<1x128xf32, #tpu.memory_space<vmem>>, %arg6: memref<256x256xf32, #tpu.memory_space<vmem>>, %arg7: memref<1x256xf32, #tpu.memory_space<vmem>>, %arg8: memref<256x128xf32, #tpu.memory_space<vmem>>, %arg9: memref<1x128xf32, #tpu.memory_space<vmem>>, %arg10: memref<8x128xf32, #tpu.memory_space<vmem>>) attributes {dimension_semantics = [#tpu.dimension_semantics<parallel>], iteration_bounds = array<i64: 1>, scalar_prefetch = 0 : i64, scratch_operands = 0 : i64, tpu.core_type = #tpu.core_type<tc>, window_params = [{transform_indices = @transform_0, window_bounds = array<i64: 192, 140>}, {pipeline_mode = #tpu.pipeline_mode<synchronous>, transform_indices = @transform_1, window_bounds = array<i64: 140, 768>}, {pipeline_mode = #tpu.pipeline_mode<synchronous>, transform_indices = @transform_2, window_bounds = array<i64: 1, 256>}, {pipeline_mode = #tpu.pipeline_mode<synchronous>, transform_indices = @transform_3, window_bounds = array<i64: 5, 256, 256>}, {pipeline_mode = #tpu.pipeline_mode<synchronous>, transform_indices = @transform_4, window_bounds = array<i64: 1, 128>}, {pipeline_mode = #tpu.pipeline_mode<synchronous>, transform_indices = @transform_5, window_bounds = array<i64: 256, 256>}, {pipeline_mode = #tpu.pipeline_mode<synchronous>, transform_indices = @transform_6, window_bounds = array<i64: 1, 256>}, {pipeline_mode = #tpu.pipeline_mode<synchronous>, transform_indices = @transform_7, window_bounds = array<i64: 256, 128>}, {pipeline_mode = #tpu.pipeline_mode<synchronous>, transform_indices = @transform_8, window_bounds = array<i64: 1, 128>}, {transform_indices = @transform_9, window_bounds = array<i64: 8, 128>}]} {
    %c0 = arith.constant 0 : index
    %c0_0 = arith.constant 0 : index
    %0 = vector.load %arg1[%c0, %c0_0] : memref<192x140xf32, #tpu.memory_space<vmem>>, vector<192x140xf32>
    %c0_1 = arith.constant 0 : index
    %c0_2 = arith.constant 0 : index
    %1 = vector.load %arg2[%c0_1, %c0_2] : memref<140x768xf32, #tpu.memory_space<vmem>>, vector<140x768xf32>
    %cst = arith.constant dense<0.000000e+00> : vector<192x768xf32>
    %2 = tpu.matmul %0, %1, %cst {dimension_numbers = #tpu.dot_dimension_numbers<[1], [0], [0], [1], [0, 0, 1, 1], [], []>} : vector<192x140xf32>, vector<140x768xf32>, vector<192x768xf32> -> vector<192x768xf32>
    %3 = vector.extract_strided_slice %2 {offsets = [0, 0], sizes = [192, 256], strides = [1, 1]} : vector<192x768xf32> to vector<192x256xf32>
    %4 = vector.extract_strided_slice %2 {offsets = [0, 256], sizes = [192, 256], strides = [1, 1]} : vector<192x768xf32> to vector<192x256xf32>
    %5 = arith.maximumf %3, %4 : vector<192x256xf32>
    %6 = vector.extract_strided_slice %2 {offsets = [0, 512], sizes = [192, 256], strides = [1, 1]} : vector<192x768xf32> to vector<192x256xf32>
    %7 = arith.maximumf %5, %6 : vector<192x256xf32>
    %8 = vector.shape_cast %7 : vector<192x256xf32> to vector<8x3x8x256xf32>
    %9 = vector.extract_strided_slice %8 {offsets = [0, 0, 0, 0], sizes = [8, 1, 8, 256], strides = [1, 1, 1, 1]} : vector<8x3x8x256xf32> to vector<8x1x8x256xf32>
    %10 = vector.shape_cast %9 : vector<8x1x8x256xf32> to vector<8x8x256xf32>
    %11 = vector.extract_strided_slice %8 {offsets = [0, 1, 0, 0], sizes = [8, 1, 8, 256], strides = [1, 1, 1, 1]} : vector<8x3x8x256xf32> to vector<8x1x8x256xf32>
    %12 = vector.shape_cast %11 : vector<8x1x8x256xf32> to vector<8x8x256xf32>
    %13 = arith.maximumf %10, %12 : vector<8x8x256xf32>
    %14 = vector.extract_strided_slice %8 {offsets = [0, 2, 0, 0], sizes = [8, 1, 8, 256], strides = [1, 1, 1, 1]} : vector<8x3x8x256xf32> to vector<8x1x8x256xf32>
    %15 = vector.shape_cast %14 : vector<8x1x8x256xf32> to vector<8x8x256xf32>
    %16 = arith.maximumf %13, %15 : vector<8x8x256xf32>
    %17 = vector.shape_cast %16 : vector<8x8x256xf32> to vector<64x256xf32>
    %c0_3 = arith.constant 0 : index
    %c0_4 = arith.constant 0 : index
    %18 = vector.load %arg3[%c0_3, %c0_4] : memref<1x256xf32, #tpu.memory_space<vmem>>, vector<1x256xf32>
    %19 = vector.broadcast %18 : vector<1x256xf32> to vector<64x256xf32>
    %20 = arith.addf %17, %19 : vector<64x256xf32>
    %cst_5 = arith.constant 0.000000e+00 : f32
    %21 = vector.broadcast %cst_5 : f32 to vector<64x256xf32>
    %22 = arith.maximumf %20, %21 : vector<64x256xf32>
    %23 = vector.extract_strided_slice %22 {offsets = [0, 0], sizes = [32, 256], strides = [1, 1]} : vector<64x256xf32> to vector<32x256xf32>
    %c0_6 = arith.constant 0 : index
    %c0_7 = arith.constant 0 : index
    %c0_8 = arith.constant 0 : index
    %24 = vector.load %arg4[%c0_6, %c0_7, %c0_8] : memref<5x256x256xf32, #tpu.memory_space<vmem>>, vector<1x256x256xf32>
    %25 = vector.shape_cast %24 : vector<1x256x256xf32> to vector<256x256xf32>
    %cst_9 = arith.constant dense<0.000000e+00> : vector<32x256xf32>
    %26 = tpu.matmul %23, %25, %cst_9 {dimension_numbers = #tpu.dot_dimension_numbers<[1], [0], [0], [1], [0, 0, 1, 1], [], []>} : vector<32x256xf32>, vector<256x256xf32>, vector<32x256xf32> -> vector<32x256xf32>
    %27 = vector.extract_strided_slice %22 {offsets = [8, 0], sizes = [32, 256], strides = [1, 1]} : vector<64x256xf32> to vector<32x256xf32>
    %c1 = arith.constant 1 : index
    %c0_10 = arith.constant 0 : index
    %c0_11 = arith.constant 0 : index
    %28 = vector.load %arg4[%c1, %c0_10, %c0_11] : memref<5x256x256xf32, #tpu.memory_space<vmem>>, vector<1x256x256xf32>
    %29 = vector.shape_cast %28 : vector<1x256x256xf32> to vector<256x256xf32>
    %cst_12 = arith.constant dense<0.000000e+00> : vector<32x256xf32>
    %30 = tpu.matmul %27, %29, %cst_12 {dimension_numbers = #tpu.dot_dimension_numbers<[1], [0], [0], [1], [0, 0, 1, 1], [], []>} : vector<32x256xf32>, vector<256x256xf32>, vector<32x256xf32> -> vector<32x256xf32>
    %31 = arith.addf %26, %30 : vector<32x256xf32>
    %32 = vector.extract_strided_slice %22 {offsets = [16, 0], sizes = [32, 256], strides = [1, 1]} : vector<64x256xf32> to vector<32x256xf32>
    %c2 = arith.constant 2 : index
    %c0_13 = arith.constant 0 : index
    %c0_14 = arith.constant 0 : index
    %33 = vector.load %arg4[%c2, %c0_13, %c0_14] : memref<5x256x256xf32, #tpu.memory_space<vmem>>, vector<1x256x256xf32>
    %34 = vector.shape_cast %33 : vector<1x256x256xf32> to vector<256x256xf32>
    %cst_15 = arith.constant dense<0.000000e+00> : vector<32x256xf32>
    %35 = tpu.matmul %32, %34, %cst_15 {dimension_numbers = #tpu.dot_dimension_numbers<[1], [0], [0], [1], [0, 0, 1, 1], [], []>} : vector<32x256xf32>, vector<256x256xf32>, vector<32x256xf32> -> vector<32x256xf32>
    %36 = arith.addf %31, %35 : vector<32x256xf32>
    %37 = vector.extract_strided_slice %22 {offsets = [24, 0], sizes = [32, 256], strides = [1, 1]} : vector<64x256xf32> to vector<32x256xf32>
    %c3 = arith.constant 3 : index
    %c0_16 = arith.constant 0 : index
    %c0_17 = arith.constant 0 : index
    %38 = vector.load %arg4[%c3, %c0_16, %c0_17] : memref<5x256x256xf32, #tpu.memory_space<vmem>>, vector<1x256x256xf32>
    %39 = vector.shape_cast %38 : vector<1x256x256xf32> to vector<256x256xf32>
    %cst_18 = arith.constant dense<0.000000e+00> : vector<32x256xf32>
    %40 = tpu.matmul %37, %39, %cst_18 {dimension_numbers = #tpu.dot_dimension_numbers<[1], [0], [0], [1], [0, 0, 1, 1], [], []>} : vector<32x256xf32>, vector<256x256xf32>, vector<32x256xf32> -> vector<32x256xf32>
    %41 = arith.addf %36, %40 : vector<32x256xf32>
    %42 = vector.extract_strided_slice %22 {offsets = [32, 0], sizes = [32, 256], strides = [1, 1]} : vector<64x256xf32> to vector<32x256xf32>
    %c4 = arith.constant 4 : index
    %c0_19 = arith.constant 0 : index
    %c0_20 = arith.constant 0 : index
    %43 = vector.load %arg4[%c4, %c0_19, %c0_20] : memref<5x256x256xf32, #tpu.memory_space<vmem>>, vector<1x256x256xf32>
    %44 = vector.shape_cast %43 : vector<1x256x256xf32> to vector<256x256xf32>
    %cst_21 = arith.constant dense<0.000000e+00> : vector<32x256xf32>
    %45 = tpu.matmul %42, %44, %cst_21 {dimension_numbers = #tpu.dot_dimension_numbers<[1], [0], [0], [1], [0, 0, 1, 1], [], []>} : vector<32x256xf32>, vector<256x256xf32>, vector<32x256xf32> -> vector<32x256xf32>
    %46 = arith.addf %41, %45 : vector<32x256xf32>
    %47 = vector.extract_strided_slice %46 {offsets = [0, 0], sizes = [32, 128], strides = [1, 1]} : vector<32x256xf32> to vector<32x128xf32>
    %48 = vector.extract_strided_slice %46 {offsets = [0, 128], sizes = [32, 128], strides = [1, 1]} : vector<32x256xf32> to vector<32x128xf32>
    %49 = arith.maximumf %47, %48 : vector<32x128xf32>
    %50 = vector.shape_cast %49 : vector<32x128xf32> to vector<2x2x8x128xf32>
    %51 = vector.extract_strided_slice %50 {offsets = [0, 0, 0, 0], sizes = [2, 1, 8, 128], strides = [1, 1, 1, 1]} : vector<2x2x8x128xf32> to vector<2x1x8x128xf32>
    %52 = vector.shape_cast %51 : vector<2x1x8x128xf32> to vector<2x8x128xf32>
    %53 = vector.extract_strided_slice %50 {offsets = [0, 1, 0, 0], sizes = [2, 1, 8, 128], strides = [1, 1, 1, 1]} : vector<2x2x8x128xf32> to vector<2x1x8x128xf32>
    %54 = vector.shape_cast %53 : vector<2x1x8x128xf32> to vector<2x8x128xf32>
    %55 = arith.maximumf %52, %54 : vector<2x8x128xf32>
    %56 = vector.shape_cast %55 : vector<2x8x128xf32> to vector<16x128xf32>
    %c0_22 = arith.constant 0 : index
    %c0_23 = arith.constant 0 : index
    %57 = vector.load %arg5[%c0_22, %c0_23] : memref<1x128xf32, #tpu.memory_space<vmem>>, vector<1x128xf32>
    %58 = vector.broadcast %57 : vector<1x128xf32> to vector<16x128xf32>
    %59 = arith.addf %56, %58 : vector<16x128xf32>
    %cst_24 = arith.constant 0.000000e+00 : f32
    %60 = vector.broadcast %cst_24 : f32 to vector<16x128xf32>
    %61 = arith.maximumf %59, %60 : vector<16x128xf32>
    %62 = vector.extract_strided_slice %61 {offsets = [0, 0], sizes = [8, 128], strides = [1, 1]} : vector<16x128xf32> to vector<8x128xf32>
    %63 = vector.extract_strided_slice %61 {offsets = [8, 0], sizes = [8, 128], strides = [1, 1]} : vector<16x128xf32> to vector<8x128xf32>
    %64 = tpu.concatenate %62, %63 in 1 : vector<8x128xf32>, vector<8x128xf32> -> vector<8x256xf32>
    %c0_25 = arith.constant 0 : index
    %c0_26 = arith.constant 0 : index
    %65 = vector.load %arg6[%c0_25, %c0_26] : memref<256x256xf32, #tpu.memory_space<vmem>>, vector<256x256xf32>
    %cst_27 = arith.constant dense<0.000000e+00> : vector<8x256xf32>
    %66 = tpu.matmul %64, %65, %cst_27 {dimension_numbers = #tpu.dot_dimension_numbers<[1], [0], [0], [1], [0, 0, 1, 1], [], []>} : vector<8x256xf32>, vector<256x256xf32>, vector<8x256xf32> -> vector<8x256xf32>
    %c0_28 = arith.constant 0 : index
    %c0_29 = arith.constant 0 : index
    %67 = vector.load %arg7[%c0_28, %c0_29] : memref<1x256xf32, #tpu.memory_space<vmem>>, vector<1x256xf32>
    %68 = vector.broadcast %67 : vector<1x256xf32> to vector<8x256xf32>
    %69 = arith.addf %66, %68 : vector<8x256xf32>
    %cst_30 = arith.constant 0.000000e+00 : f32
    %70 = vector.broadcast %cst_30 : f32 to vector<8x256xf32>
    %71 = arith.maximumf %69, %70 : vector<8x256xf32>
    %c0_31 = arith.constant 0 : index
    %c0_32 = arith.constant 0 : index
    %72 = vector.load %arg8[%c0_31, %c0_32] : memref<256x128xf32, #tpu.memory_space<vmem>>, vector<256x128xf32>
    %cst_33 = arith.constant dense<0.000000e+00> : vector<8x128xf32>
    %73 = tpu.matmul %71, %72, %cst_33 {dimension_numbers = #tpu.dot_dimension_numbers<[1], [0], [0], [1], [0, 0, 1, 1], [], []>} : vector<8x256xf32>, vector<256x128xf32>, vector<8x128xf32> -> vector<8x128xf32>
    %c0_34 = arith.constant 0 : index
    %c0_35 = arith.constant 0 : index
    %74 = vector.load %arg9[%c0_34, %c0_35] : memref<1x128xf32, #tpu.memory_space<vmem>>, vector<1x128xf32>
    %75 = vector.broadcast %74 : vector<1x128xf32> to vector<8x128xf32>
    %76 = arith.addf %73, %75 : vector<8x128xf32>
    %c0_36 = arith.constant 0 : index
    %c0_37 = arith.constant 0 : index
    %77 = vector.load %arg10[%c0_36, %c0_37] : memref<8x128xf32, #tpu.memory_space<vmem>>, vector<8x128xf32>
    tpu.vector_store %arg10[%c0_36, %c0_37], %76 {strides = array<i32>} : memref<8x128xf32, #tpu.memory_space<vmem>>, vector<8x128xf32>,
    return
  }
  func.func @transform_0(%arg0: i32) -> (i32, i32) {
    %c0_i32 = arith.constant 0 : i32
    %c0_i32_0 = arith.constant 0 : i32
    return %arg0, %c0_i32 : i32, i32
  }
  func.func @transform_1(%arg0: i32) -> (i32, i32) {
    %c0_i32 = arith.constant 0 : i32
    %c0_i32_0 = arith.constant 0 : i32
    %c0_i32_1 = arith.constant 0 : i32
    return %c0_i32, %c0_i32_0 : i32, i32
  }
  func.func @transform_2(%arg0: i32) -> (i32, i32) {
    %c0_i32 = arith.constant 0 : i32
    %c0_i32_0 = arith.constant 0 : i32
    %c0_i32_1 = arith.constant 0 : i32
    return %c0_i32, %c0_i32_0 : i32, i32
  }
  func.func @transform_3(%arg0: i32) -> (i32, i32, i32) {
    %c0_i32 = arith.constant 0 : i32
    %c0_i32_0 = arith.constant 0 : i32
    %c0_i32_1 = arith.constant 0 : i32
    %c0_i32_2 = arith.constant 0 : i32
    return %c0_i32, %c0_i32_0, %c0_i32_1 : i32, i32, i32
  }
  func.func @transform_4(%arg0: i32) -> (i32, i32) {
    %c0_i32 = arith.constant 0 : i32
    %c0_i32_0 = arith.constant 0 : i32
    %c0_i32_1 = arith.constant 0 : i32
    return %c0_i32, %c0_i32_0 : i32, i32
  }
  func.func @transform_5(%arg0: i32) -> (i32, i32) {
    %c0_i32 = arith.constant 0 : i32
    %c0_i32_0 = arith.constant 0 : i32
    %c0_i32_1 = arith.constant 0 : i32
    return %c0_i32, %c0_i32_0 : i32, i32
  }
  func.func @transform_6(%arg0: i32) -> (i32, i32) {
    %c0_i32 = arith.constant 0 : i32
    %c0_i32_0 = arith.constant 0 : i32
    %c0_i32_1 = arith.constant 0 : i32
    return %c0_i32, %c0_i32_0 : i32, i32
  }
  func.func @transform_7(%arg0: i32) -> (i32, i32) {
    %c0_i32 = arith.constant 0 : i32
    %c0_i32_0 = arith.constant 0 : i32
    %c0_i32_1 = arith.constant 0 : i32
    return %c0_i32, %c0_i32_0 : i32, i32
  }
  func.func @transform_8(%arg0: i32) -> (i32, i32) {
    %c0_i32 = arith.constant 0 : i32
    %c0_i32_0 = arith.constant 0 : i32
    %c0_i32_1 = arith.constant 0 : i32
    return %c0_i32, %c0_i32_0 : i32, i32
  }
  func.func @transform_9(%arg0: i32) -> (i32, i32) {
    %c0_i32 = arith.constant 0 : i32
    %c0_i32_0 = arith.constant 0 : i32
    return %arg0, %c0_i32 : i32, i32
  }
}

</mosaic_0001>

<bundles_post_ra>
// kernel: net_forward.1
= control target key start
LH: loop header
LB: loop body
LE: loop exit
PB: predicated region body
PF: predicated region fallthrough
CT: control target
= control target key end

     0   :  { %vm261_vm0 = vcmask 1043456   ;;  %vm188_vm1 = vcmask 97280   ;;  %s5035_s1 = inlined_call_operand.vmem [shape: f32[140,768], index: 1, kind: input, shape index: {}]   ;;  %s5036_s0 = inlined_call_operand.vmem [shape: f32[192,140], index: 0, kind: input, shape index: {}]   ;;  %s5037_s3 = inlined_call_operand.vmem [shape: f32[5,256,256], index: 3, kind: input, shape index: {}]   ;;  %s5038_s2 = inlined_call_operand.vmem [shape: f32[1,256], index: 2, kind: input, shape index: {}]   ;;  %s5039_s5 = inlined_call_operand.vmem [shape: f32[256,256], index: 5, kind: input, shape index: {}]   ;;  %s5040_s7 = inlined_call_operand.vmem [shape: f32[256,128], index: 7, kind: input, shape index: {}]   ;;  %s5041_s4 = inlined_call_operand.vmem [shape: f32[1,128], index: 4, kind: input, shape index: {}]   ;;  %s5042_s6 = inlined_call_operand.vmem [shape: f32[1,256], index: 6, kind: input, shape index: {}]   ;;  %s5043_s8 = inlined_call_operand.vmem [shape: f32[1,128], index: 8, kind: input, shape index: {}]   ;;  %s5044_s9 = inlined_call_operand.vmem [shape: f32[8,128], index: 9, kind: output, shape index: {}]  }
   0x1   :  { %v171_v0 = vld [vmem:[%s5035_s1 + $0x2d8] sm:$0xff]  ;;  %v173_v1 = vld [vmem:[%s5035_s1 + $0x2e8] sm:$0xff]  ;;  %v170_v2 = vld [vmem:[%s5035_s1 + $0x2d0] sm:$0xff] }
   0x2   :  { %280 = vmatprep.subr.mxu0 %v171_v0  ;;  %489 = vmatprep.subr.mxu1 %v173_v1  ;;  %v172_v3 = vld [vmem:[%s5035_s1 + $0x2e0] sm:$0xff]  ;;  %v165_v4 = vld [vmem:[%s5035_s1 + $0x2a8] sm:$0xff]  ;;  %v167_v5 = vld [vmem:[%s5035_s1 + $0x2b8] sm:$0xff] }
   0x3   :  { %281 = vmatpush1.msra.mxu0 %v170_v2  ;;  %490 = vmatpush1.msra.mxu1 %v172_v3  ;;  %v164_v6 = vld [vmem:[%s5035_s1 + $0x2a0] sm:$0xff]  ;;  %v166_v7 = vld [vmem:[%s5035_s1 + $0x2b0] sm:$0xff]  ;;  %v159_v8 = vld [vmem:[%s5035_s1 + $0x278] sm:$0xff] }
   0x4   :  { %282 = vmatprep.subr.mxu0 %v165_v4  ;;  %491 = vmatprep.subr.mxu1 %v167_v5  ;;  %v161_v9 = vld [vmem:[%s5035_s1 + $0x288] sm:$0xff]  ;;  %v158_v10 = vld [vmem:[%s5035_s1 + $0x270] sm:$0xff]  ;;  %v160_v11 = vld [vmem:[%s5035_s1 + $0x280] sm:$0xff] }
   0x5   :  { %283 = vmatpush1.msra.mxu0 %v164_v6  ;;  %492 = vmatpush1.msra.mxu1 %v166_v7  ;;  %v153_v12 = vld [vmem:[%s5035_s1 + $0x248] sm:$0xff]  ;;  %v155_v13 = vld [vmem:[%s5035_s1 + $0x258] sm:$0xff]  ;;  %v152_v14 = vld [vmem:[%s5035_s1 + $0x240] sm:$0xff] }
   0x6   :  { %284 = vmatprep.subr.mxu0 %v159_v8  ;;  %493 = vmatprep.subr.mxu1 %v161_v9  ;;  %v154_v15 = vld [vmem:[%s5035_s1 + $0x250] sm:$0xff]  ;;  %v147_v16 = vld [vmem:[%s5035_s1 + $0x218] sm:$0xff]  ;;  %v149_v17 = vld [vmem:[%s5035_s1 + $0x228] sm:$0xff] }
   0x7   :  { %285 = vmatpush1.msra.mxu0 %v158_v10  ;;  %494 = vmatpush1.msra.mxu1 %v160_v11  ;;  %v146_v18 = vld [vmem:[%s5035_s1 + $0x210] sm:$0xff]  ;;  %v148_v19 = vld [vmem:[%s5035_s1 + $0x220] sm:$0xff]  ;;  %v141_v20 = vld [vmem:[%s5035_s1 + $0x1e8] sm:$0xff] }
   0x8   :  { %286 = vmatprep.subr.mxu0 %v153_v12  ;;  %495 = vmatprep.subr.mxu1 %v155_v13  ;;  %v143_v21 = vld [vmem:[%s5035_s1 + $0x1f8] sm:$0xff]  ;;  %v140_v22 = vld [vmem:[%s5035_s1 + $0x1e0] sm:$0xff]  ;;  %v142_v23 = vld [vmem:[%s5035_s1 + $0x1f0] sm:$0xff] }
   0x9   :  { %287 = vmatpush1.msra.mxu0 %v152_v14  ;;  %496 = vmatpush1.msra.mxu1 %v154_v15  ;;  %v135_v24 = vld [vmem:[%s5035_s1 + $0x1b8] sm:$0xff]  ;;  %v137_v25 = vld [vmem:[%s5035_s1 + $0x1c8] sm:$0xff]  ;;  %v134_v26 = vld [vmem:[%s5035_s1 + $0x1b0] sm:$0xff] }
   0xa   :  { %288 = vmatprep.subr.mxu0 %v147_v16  ;;  %497 = vmatprep.subr.mxu1 %v149_v17  ;;  %v136_v27 = vld [vmem:[%s5035_s1 + $0x1c0] sm:$0xff]  ;;  %v129_v28 = vld [vmem:[%s5035_s1 + $0x188] sm:$0xff]  ;;  %v131_v29 = vld [vmem:[%s5035_s1 + $0x198] sm:$0xff] }
   0xb   :  { %289 = vmatpush1.msra.mxu0 %v146_v18  ;;  %498 = vmatpush1.msra.mxu1 %v148_v19  ;;  %v128_v30 = vld [vmem:[%s5035_s1 + $0x180] sm:$0xff]  ;;  %v130_v31 = vld [vmem:[%s5035_s1 + $0x190] sm:$0xff]  ;;  %v123_v32 = vld [vmem:[%s5035_s1 + $0x158] sm:$0xff] }
   0xc   :  { %290 = vmatprep.subr.mxu0 %v141_v20  ;;  %499 = vmatprep.subr.mxu1 %v143_v21  ;;  %v125_v33 = vld [vmem:[%s5035_s1 + $0x168] sm:$0xff]  ;;  %v122_v34 = vld [vmem:[%s5035_s1 + $0x150] sm:$0xff]  ;;  %v124_v35 = vld [vmem:[%s5035_s1 + $0x160] sm:$0xff] }
   0xd   :  { %291 = vmatpush1.msra.mxu0 %v140_v22  ;;  %500 = vmatpush1.msra.mxu1 %v142_v23  ;;  %v117_v36 = vld [vmem:[%s5035_s1 + $0x128] sm:$0xff]  ;;  %v119_v37 = vld [vmem:[%s5035_s1 + $0x138] sm:$0xff]  ;;  %v116_v38 = vld [vmem:[%s5035_s1 + $0x120] sm:$0xff] }
   0xe   :  { %292 = vmatprep.subr.mxu0 %v135_v24  ;;  %501 = vmatprep.subr.mxu1 %v137_v25  ;;  %v118_v39 = vld [vmem:[%s5035_s1 + $0x130] sm:$0xff]  ;;  %v111_v40 = vld [vmem:[%s5035_s1 + $0xf8] sm:$0xff]  ;;  %v113_v41 = vld [vmem:[%s5035_s1 + $0x108] sm:$0xff] }
   0xf   :  { %293 = vmatpush1.msra.mxu0 %v134_v26  ;;  %502 = vmatpush1.msra.mxu1 %v136_v27  ;;  %v110_v42 = vld [vmem:[%s5035_s1 + $0xf0] sm:$0xff]  ;;  %v112_v43 = vld [vmem:[%s5035_s1 + $0x100] sm:$0xff]  ;;  %v105_v44 = vld [vmem:[%s5035_s1 + $0xc8] sm:$0xff] }
  0x10   :  { %294 = vmatprep.subr.mxu0 %v129_v28  ;;  %503 = vmatprep.subr.mxu1 %v131_v29  ;;  %v107_v45 = vld [vmem:[%s5035_s1 + $0xd8] sm:$0xff]  ;;  %v104_v46 = vld [vmem:[%s5035_s1 + $0xc0] sm:$0xff]  ;;  %v106_v47 = vld [vmem:[%s5035_s1 + $0xd0] sm:$0xff] }
  0x11   :  { %295 = vmatpush1.msra.mxu0 %v128_v30  ;;  %504 = vmatpush1.msra.mxu1 %v130_v31  ;;  %v99_v48 = vld [vmem:[%s5035_s1 + $0x98] sm:$0xff]  ;;  %v101_v49 = vld [vmem:[%s5035_s1 + $0xa8] sm:$0xff]  ;;  %v98_v50 = vld [vmem:[%s5035_s1 + $0x90] sm:$0xff] }
  0x12   :  { %296 = vmatprep.subr.mxu0 %v123_v32  ;;  %505 = vmatprep.subr.mxu1 %v125_v33  ;;  %v100_v51 = vld [vmem:[%s5035_s1 + $0xa0] sm:$0xff]  ;;  %v93_v52 = vld [vmem:[%s5035_s1 + $0x68] sm:$0xff]  ;;  %v95_v53 = vld [vmem:[%s5035_s1 + $0x78] sm:$0xff] }
  0x13   :  { %297 = vmatpush1.msra.mxu0 %v122_v34  ;;  %506 = vmatpush1.msra.mxu1 %v124_v35  ;;  %v92_v54 = vld [vmem:[%s5035_s1 + $0x60] sm:$0xff]  ;;  %v94_v55 = vld [vmem:[%s5035_s1 + $0x70] sm:$0xff]  ;;  %v87_v56 = vld [vmem:[%s5035_s1 + $0x38] sm:$0xff] }
  0x14   :  { %298 = vmatprep.subr.mxu0 %v117_v36  ;;  %507 = vmatprep.subr.mxu1 %v119_v37  ;;  %v89_v57 = vld [vmem:[%s5035_s1 + $0x48] sm:$0xff]  ;;  %v86_v58 = vld [vmem:[%s5035_s1 + $0x30] sm:$0xff]  ;;  %v88_v59 = vld [vmem:[%s5035_s1 + $0x40] sm:$0xff] }
  0x15   :  { %299 = vmatpush1.msra.mxu0 %v116_v38  ;;  %508 = vmatpush1.msra.mxu1 %v118_v39  ;;  %v81_v60 = vld [vmem:[%s5035_s1 + $0x8] sm:$0xff]  ;;  %v83_v61 = vld [vmem:[%s5035_s1 + $0x18] sm:$0xff]  ;;  %v80_v62 = vld [vmem:[%s5035_s1] sm:$0xff] }
  0x16   :  { %300 = vmatprep.subr.mxu0 %v111_v40  ;;  %509 = vmatprep.subr.mxu1 %v113_v41  ;;  %v82_v63 = vld [vmem:[%s5035_s1 + $0x10] sm:$0xff]  ;;  %v183_v0 = vld [vmem:[%s5035_s1 + $0x338] sm:$0xf]  ;;  %v185_v1 = vld [vmem:[%s5035_s1 + $0x348] sm:$0xf] }
  0x17   :  { %301 = vmatpush1.msra.mxu0 %v110_v42  ;;  %510 = vmatpush1.msra.mxu1 %v112_v43  ;;  %v182_v2 = vld [vmem:[%s5035_s1 + $0x330] sm:$0xf]  ;;  %v184_v3 = vld [vmem:[%s5035_s1 + $0x340] sm:$0xf]  ;;  %v177_v4 = vld [vmem:[%s5035_s1 + $0x308] sm:$0xff] }
  0x18   :  { %302 = vmatprep.subr.mxu0 %v105_v44  ;;  %511 = vmatprep.subr.mxu1 %v107_v45  ;;  %v179_v5 = vld [vmem:[%s5035_s1 + $0x318] sm:$0xff]  ;;  %v176_v6 = vld [vmem:[%s5035_s1 + $0x300] sm:$0xff]  ;;  %v2791_v7 = vld [vmem:[%s5036_s0 + $0x8] sm:$0xff] }
  0x19   :  { %303 = vmatpush1.msra.mxu0 %v104_v46  ;;  %512 = vmatpush1.msra.mxu1 %v106_v47  ;;  %v178_v8 = vld [vmem:[%s5035_s1 + $0x310] sm:$0xff]  ;;  %v2801_v9 = vld [vmem:[%s5036_s0] sm:$0xff]  ;;  %v175_v10 = vld [vmem:[%s5035_s1 + $0x2f8] sm:$0xff] }
  0x1a   :  { %304 = vmatprep.subr.mxu0 %v99_v48  ;;  %513 = vmatprep.subr.mxu1 %v101_v49  ;;  %v2811_v11 = vld [vmem:[%s5036_s0 + $0x18] sm:$0xff]  ;;  %v174_v12 = vld [vmem:[%s5035_s1 + $0x2f0] sm:$0xff]  ;;  %v169_v13 = vld [vmem:[%s5035_s1 + $0x2c8] sm:$0xff] }
  0x1b   :  { %305 = vmatpush1.msra.mxu0 %v98_v50  ;;  %514 = vmatpush1.msra.mxu1 %v100_v51  ;;  %v2828_v14 = vld [vmem:[%s5036_s0 + $0x10] sm:$0xff]  ;;  %v2835_v15 = vld [vmem:[%s5036_s0 + $0x28] sm:$0xff]  ;;  %v168_v16 = vld [vmem:[%s5035_s1 + $0x2c0] sm:$0xff] }
  0x1c   :  { %306 = vmatprep.subr.mxu0 %v93_v52  ;;  %515 = vmatprep.subr.mxu1 %v95_v53  ;;  %v163_v17 = vld [vmem:[%s5035_s1 + $0x298] sm:$0xff]  ;;  %v2852_v18 = vld [vmem:[%s5036_s0 + $0x20] sm:$0xff]  ;;  %v162_v20 = vld [vmem:[%s5035_s1 + $0x290] sm:$0xff] }
  0x1d   :  { %307 = vmatpush1.msra.mxu0 %v92_v54  ;;  %516 = vmatpush1.msra.mxu1 %v94_v55  ;;  %v2857_v19 = vld [vmem:[%s5036_s0 + $0x38] sm:$0xff]  ;;  %v157_v21 = vld [vmem:[%s5035_s1 + $0x268] sm:$0xff]  ;;  %v2874_v22 = vld [vmem:[%s5036_s0 + $0x30] sm:$0xff] }
  0x1e   :  { %308 = vmatprep.subr.mxu0 %v87_v56  ;;  %517 = vmatprep.subr.mxu1 %v89_v57  ;;  %v2879_v23 = vld [vmem:[%s5036_s0 + $0x48] sm:$0xff]  ;;  %v156_v24 = vld [vmem:[%s5035_s1 + $0x260] sm:$0xff]  ;;  %v151_v25 = vld [vmem:[%s5035_s1 + $0x238] sm:$0xff] }
  0x1f   :  { %309 = vmatpush1.msra.mxu0 %v86_v58  ;;  %518 = vmatpush1.msra.mxu1 %v88_v59  ;;  %v2896_v26 = vld [vmem:[%s5036_s0 + $0x40] sm:$0xff]  ;;  %v2901_v27 = vld [vmem:[%s5036_s0 + $0x58] sm:$0xff]  ;;  %v150_v28 = vld [vmem:[%s5035_s1 + $0x230] sm:$0xff] }
  0x20   :  { %310 = vmatprep.subr.mxu0 %v81_v60  ;;  %519 = vmatprep.subr.mxu1 %v83_v61  ;;  %v145_v29 = vld [vmem:[%s5035_s1 + $0x208] sm:$0xff]  ;;  %v2918_v30 = vld [vmem:[%s5036_s0 + $0x50] sm:$0xff]  ;;  %v144_v32 = vld [vmem:[%s5035_s1 + $0x200] sm:$0xff] }
  0x21   :  { %311 = vmatpush1.msra.mxu0 %v80_v62  ;;  %520 = vmatpush1.msra.mxu1 %v82_v63  ;;  %v2923_v31 = vld [vmem:[%s5036_s0 + $0x68] sm:$0xff]  ;;  %v139_v33 = vld [vmem:[%s5035_s1 + $0x1d8] sm:$0xff]  ;;  %v2940_v34 = vld [vmem:[%s5036_s0 + $0x60] sm:$0xff] }
  0x22   :  { %2152 = vmatprep.subr.msk.mxu0 %vm261_vm0, %v183_v0  ;;  %2178 = vmatprep.subr.msk.mxu1 %vm261_vm0, %v185_v1  ;;  %v2945_v35 = vld [vmem:[%s5036_s0 + $0x78] sm:$0xff]  ;;  %v138_v36 = vld [vmem:[%s5035_s1 + $0x1d0] sm:$0xff]  ;;  %v133_v37 = vld [vmem:[%s5035_s1 + $0x1a8] sm:$0xff] }
  0x23   :  { %2153 = vmatpush2.msk.msra.mxu0 %vm261_vm0, %v182_v2  ;;  %2179 = vmatpush2.msk.msra.mxu1 %vm261_vm0, %v184_v3  ;;  %v2962_v38 = vld [vmem:[%s5036_s0 + $0x70] sm:$0xff]  ;;  %v2967_v39 = vld [vmem:[%s5036_s0 + $0x88] sm:$0xff]  ;;  %v132_v40 = vld [vmem:[%s5035_s1 + $0x1a0] sm:$0xff] }
  0x24   :  { %342 = vmatprep.subr.mxu0 %v177_v4  ;;  %551 = vmatprep.subr.mxu1 %v179_v5  ;;  %v127_v41 = vld [vmem:[%s5035_s1 + $0x178] sm:$0xff]  ;;  %v2984_v42 = vld [vmem:[%s5036_s0 + $0x80] sm:$0xff]  ;;  %v126_v44 = vld [vmem:[%s5035_s1 + $0x170] sm:$0xff] }
  0x25   :  { %343 = vmatpush2.msra.mxu0 %v176_v6  ;;  %2154 = vmatprep.mubr.msk.f32.mxu0 %vm188_vm1, %v2791_v7  ;;  %v2989_v43 = vld [vmem:[%s5036_s0 + $0x98] sm:$0xff]  ;;  %v121_v45 = vld [vmem:[%s5035_s1 + $0x148] sm:$0xff]  ;;  %v3006_v46 = vld [vmem:[%s5036_s0 + $0x90] sm:$0xff] }
  0x26   :  { %552 = vmatpush2.msra.mxu1 %v178_v8  ;;  %2180 = vmatprep.mubr.msk.f32.mxu1 %vm188_vm1, %v2791_v7  ;;  %v3011_v47 = vld [vmem:[%s5036_s0 + $0xa8] sm:$0xff]  ;;  %v120_v48 = vld [vmem:[%s5035_s1 + $0x140] sm:$0xff]  ;;  %v115_v49 = vld [vmem:[%s5035_s1 + $0x118] sm:$0xff] }
  0x27   :  { %345 = vmatmul.mubr.f32.vlgmr.msra.gmra.mxu0 %v2801_v9  ;;  %554 = vmatmul.mubr.f32.vlgmr.msra.gmra.mxu1 %v2801_v9  ;;  %v3028_v50 = vld [vmem:[%s5036_s0 + $0xa0] sm:$0xff]  ;;  %v3033_v51 = vld [vmem:[%s5036_s0 + $0xb8] sm:$0xff]  ;;  %v114_v52 = vld [vmem:[%s5035_s1 + $0x110] sm:$0xff] }
  0x28   :  { %698 = vmatprep.subr.mxu0 %v175_v10  ;;  %2155 = vmatprep.mubr.msk.f32.mxu0 %vm188_vm1, %v2811_v11  ;;  %v109_v53 = vld [vmem:[%s5035_s1 + $0xe8] sm:$0xff]  ;;  %v3050_v54 = vld [vmem:[%s5036_s0 + $0xb0] sm:$0xff]  ;;  %v108_v56 = vld [vmem:[%s5035_s1 + $0xe0] sm:$0xff] }
  0x29   :  { %699 = vmatpush1.msra.mxu0 %v174_v12  ;;  %2181 = vmatprep.mubr.msk.f32.mxu1 %vm188_vm1, %v2811_v11  ;;  %v3055_v55 = vld [vmem:[%s5036_s0 + $0xc8] sm:$0xff]  ;;  %v103_v57 = vld [vmem:[%s5035_s1 + $0xb8] sm:$0xff]  ;;  %v3072_v58 = vld [vmem:[%s5036_s0 + $0xc0] sm:$0xff] }
  0x2a   :  { %700 = vmatprep.subr.mxu0 %v169_v13  ;;  %v3077_v59 = vld [vmem:[%s5036_s0 + $0xd8] sm:$0xff]  ;;  %v102_v60 = vld [vmem:[%s5035_s1 + $0xb0] sm:$0xff]  ;;  %v97_v61 = vld [vmem:[%s5035_s1 + $0x88] sm:$0xff] }
  0x2b   :  { %351 = vmatmul.mubr.f32.gmra.mxu0 %v2828_v14  ;;  %560 = vmatmul.mubr.f32.gmra.mxu1 %v2828_v14  ;;  %v3094_v62 = vld [vmem:[%s5036_s0 + $0xd0] sm:$0xff]  ;;  %v3099_v63 = vld [vmem:[%s5036_s0 + $0xe8] sm:$0xff]  ;;  %v96_v0 = vld [vmem:[%s5035_s1 + $0x80] sm:$0xff] }
  0x2c   :  { %2156 = vmatprep.mubr.msk.f32.mxu0 %vm188_vm1, %v2835_v15  ;;  %2182 = vmatprep.mubr.msk.f32.mxu1 %vm188_vm1, %v2835_v15  ;;  %v91_v1 = vld [vmem:[%s5035_s1 + $0x58] sm:$0xff]  ;;  %v3116_v2 = vld [vmem:[%s5036_s0 + $0xe0] sm:$0xff]  ;;  %v90_v4 = vld [vmem:[%s5035_s1 + $0x50] sm:$0xff] }
  0x2d   :  { %701 = vmatpush1.msra.mxu0 %v168_v16  ;;  %v3121_v3 = vld [vmem:[%s5036_s0 + $0xf8] sm:$0xff]  ;;  %v85_v5 = vld [vmem:[%s5035_s1 + $0x28] sm:$0xff]  ;;  %v3138_v6 = vld [vmem:[%s5036_s0 + $0xf0] sm:$0xff] }
  0x2e   :  { %702 = vmatprep.subr.mxu0 %v163_v17  ;;  %v3143_v8 = vld [vmem:[%s5036_s0 + $0x108] sm:$0xff]  ;;  %v84_v10 = vld [vmem:[%s5035_s1 + $0x20] sm:$0xff]  ;;  %v187_v12 = vld [vmem:[%s5035_s1 + $0x358] sm:$0xf] }
  0x2f   :  { %357 = vmatmul.mubr.f32.gmra.mxu0 %v2852_v18  ;;  %566 = vmatmul.mubr.f32.gmra.mxu1 %v2852_v18  ;;  %v3160_v13 = vld [vmem:[%s5036_s0 + $0x100] sm:$0xff]  ;;  %v3165_v16 = vld [vmem:[%s5036_s0 + $0x118] sm:$0xff]  ;;  %v186_v17 = vld [vmem:[%s5035_s1 + $0x350] sm:$0xf] }
  0x30   :  { %2157 = vmatprep.mubr.msk.f32.mxu0 %vm188_vm1, %v2857_v19  ;;  %2183 = vmatprep.mubr.msk.f32.mxu1 %vm188_vm1, %v2857_v19 }
  0x31   :  { %703 = vmatpush1.msra.mxu0 %v162_v20  ;;  %v181_v20 = vld [vmem:[%s5035_s1 + $0x328] sm:$0xff] }
  0x32   :  { %704 = vmatprep.subr.mxu0 %v157_v21  ;;  %v3183_v21 = vld [vmem:[%s5036_s0 + $0x110] sm:$0xff] }
  0x33   :  { %363 = vmatmul.mubr.f32.gmra.mxu0 %v2874_v22  ;;  %572 = vmatmul.mubr.f32.gmra.mxu1 %v2874_v22 }
  0x34   :  { %2158 = vmatprep.mubr.msk.f32.mxu0 %vm188_vm1, %v2879_v23  ;;  %2184 = vmatprep.mubr.msk.f32.mxu1 %vm188_vm1, %v2879_v23 }
  0x35   :  { %705 = vmatpush1.msra.mxu0 %v156_v24  ;;  %v3188_v24 = vld [vmem:[%s5036_s0 + $0x128] sm:$0xff] }
  0x36   :  { %706 = vmatprep.subr.mxu0 %v151_v25  ;;  %v180_v25 = vld [vmem:[%s5035_s1 + $0x320] sm:$0xff] }
  0x37   :  { %369 = vmatmul.mubr.f32.gmra.mxu0 %v2896_v26  ;;  %578 = vmatmul.mubr.f32.gmra.mxu1 %v2896_v26 }
  0x38   :  { %2159 = vmatprep.mubr.msk.f32.mxu0 %vm188_vm1, %v2901_v27  ;;  %2185 = vmatprep.mubr.msk.f32.mxu1 %vm188_vm1, %v2901_v27 }
  0x39   :  { %707 = vmatpush1.msra.mxu0 %v150_v28  ;;  %v3203_v28 = vld [vmem:[%s5036_s0 + $0x120] sm:$0xff] }
  0x3a   :  { %708 = vmatprep.subr.mxu0 %v145_v29  ;;  %v3208_v29 = vld [vmem:[%s5036_s0 + $0x138] sm:$0xff] }
  0x3b   :  { %375 = vmatmul.mubr.f32.gmra.mxu0 %v2918_v30  ;;  %584 = vmatmul.mubr.f32.gmra.mxu1 %v2918_v30 }
  0x3c   :  { %2160 = vmatprep.mubr.msk.f32.mxu0 %vm188_vm1, %v2923_v31  ;;  %2186 = vmatprep.mubr.msk.f32.mxu1 %vm188_vm1, %v2923_v31 }
  0x3d   :  { %709 = vmatpush1.msra.mxu0 %v144_v32  ;;  %v3219_v32 = vld [vmem:[%s5036_s0 + $0x130] sm:$0xff] }
  0x3e   :  { %710 = vmatprep.subr.mxu0 %v139_v33  ;;  %v3224_v33 = vld [vmem:[%s5036_s0 + $0x148] sm:$0xff] }
  0x3f   :  { %381 = vmatmul.mubr.f32.gmra.mxu0 %v2940_v34  ;;  %590 = vmatmul.mubr.f32.gmra.mxu1 %v2940_v34 }
  0x40   :  { %2161 = vmatprep.mubr.msk.f32.mxu0 %vm188_vm1, %v2945_v35  ;;  %2187 = vmatprep.mubr.msk.f32.mxu1 %vm188_vm1, %v2945_v35 }
  0x41   :  { %711 = vmatpush1.msra.mxu0 %v138_v36  ;;  %v3235_v36 = vld [vmem:[%s5036_s0 + $0x140] sm:$0xff] }
  0x42   :  { %712 = vmatprep.subr.mxu0 %v133_v37  ;;  %v3240_v37 = vld [vmem:[%s5036_s0 + $0x158] sm:$0xff] }
  0x43   :  { %387 = vmatmul.mubr.f32.gmra.mxu0 %v2962_v38  ;;  %596 = vmatmul.mubr.f32.gmra.mxu1 %v2962_v38 }
  0x44   :  { %2162 = vmatprep.mubr.msk.f32.mxu0 %vm188_vm1, %v2967_v39  ;;  %2188 = vmatprep.mubr.msk.f32.mxu1 %vm188_vm1, %v2967_v39 }
  0x45   :  { %713 = vmatpush1.msra.mxu0 %v132_v40  ;;  %v3251_v40 = vld [vmem:[%s5036_s0 + $0x150] sm:$0xff] }
  0x46   :  { %714 = vmatprep.subr.mxu0 %v127_v41  ;;  %v3256_v41 = vld [vmem:[%s5036_s0 + $0x168] sm:$0xff] }
  0x47   :  { %393 = vmatmul.mubr.f32.gmra.mxu0 %v2984_v42  ;;  %602 = vmatmul.mubr.f32.gmra.mxu1 %v2984_v42 }
  0x48   :  { %2163 = vmatprep.mubr.msk.f32.mxu0 %vm188_vm1, %v2989_v43  ;;  %2189 = vmatprep.mubr.msk.f32.mxu1 %vm188_vm1, %v2989_v43 }
  0x49   :  { %715 = vmatpush1.msra.mxu0 %v126_v44  ;;  %v3267_v44 = vld [vmem:[%s5036_s0 + $0x160] sm:$0xff] }
  0x4a   :  { %716 = vmatprep.subr.mxu0 %v121_v45  ;;  %v3272_v45 = vld [vmem:[%s5036_s0 + $0x178] sm:$0xff] }
  0x4b   :  { %399 = vmatmul.mubr.f32.gmra.mxu0 %v3006_v46  ;;  %608 = vmatmul.mubr.f32.gmra.mxu1 %v3006_v46 }
  0x4c   :  { %2164 = vmatprep.mubr.msk.f32.mxu0 %vm188_vm1, %v3011_v47  ;;  %2190 = vmatprep.mubr.msk.f32.mxu1 %vm188_vm1, %v3011_v47 }
  0x4d   :  { %717 = vmatpush1.msra.mxu0 %v120_v48  ;;  %v3283_v48 = vld [vmem:[%s5036_s0 + $0x170] sm:$0xff] }
  0x4e   :  { %718 = vmatprep.subr.mxu0 %v115_v49  ;;  %v2261_v49 = vld [vmem:[%s5037_s3 + $0x2f8] sm:$0xff] }
  0x4f   :  { %405 = vmatmul.mubr.f32.gmra.mxu0 %v3028_v50  ;;  %614 = vmatmul.mubr.f32.gmra.mxu1 %v3028_v50 }
  0x50   :  { %2165 = vmatprep.mubr.msk.f32.mxu0 %vm188_vm1, %v3033_v51  ;;  %2191 = vmatprep.mubr.msk.f32.mxu1 %vm188_vm1, %v3033_v51 }
  0x51   :  { %719 = vmatpush1.msra.mxu0 %v114_v52  ;;  %v2260_v52 = vld [vmem:[%s5037_s3 + $0x2f0] sm:$0xff]  ;;  %1208 = vmatprep.subr.mxu1 %v2261_v49  ;;  %v2317_v49 = vld [vmem:[%s5037_s3 + $0x4b8] sm:$0xff] }
  0x52   :  { %720 = vmatprep.subr.mxu0 %v109_v53  ;;  %v2259_v53 = vld [vmem:[%s5037_s3 + $0x2e8] sm:$0xff]  ;;  %1209 = vmatpush1.msra.mxu1 %v2260_v52  ;;  %v2316_v52 = vld [vmem:[%s5037_s3 + $0x4b0] sm:$0xff] }
  0x53   :  { %411 = vmatmul.mubr.f32.gmra.mxu0 %v3050_v54  ;;  %620 = vmatmul.mubr.f32.gmra.mxu1 %v3050_v54 }
  0x54   :  { %2166 = vmatprep.mubr.msk.f32.mxu0 %vm188_vm1, %v3055_v55  ;;  %2192 = vmatprep.mubr.msk.f32.mxu1 %vm188_vm1, %v3055_v55 }
  0x55   :  { %721 = vmatpush1.msra.mxu0 %v108_v56  ;;  %1210 = vmatprep.subr.mxu1 %v2259_v53  ;;  %v2251_v56 = vld [vmem:[%s5037_s3 + $0x2a8] sm:$0xff]  ;;  %v2290_v53 = vld [vmem:[%s5037_s3 + $0x3e0] sm:$0xff] }
  0x56   :  { %722 = vmatprep.subr.mxu0 %v103_v57  ;;  %v2248_v57 = vld [vmem:[%s5037_s3 + $0x290] sm:$0xff] }
  0x57   :  { %417 = vmatmul.mubr.f32.gmra.mxu0 %v3072_v58  ;;  %626 = vmatmul.mubr.f32.gmra.mxu1 %v3072_v58 }
  0x58   :  { %2167 = vmatprep.mubr.msk.f32.mxu0 %vm188_vm1, %v3077_v59  ;;  %2193 = vmatprep.mubr.msk.f32.mxu1 %vm188_vm1, %v3077_v59 }
  0x59   :  { %723 = vmatpush1.msra.mxu0 %v102_v60  ;;  %v2243_v60 = vld [vmem:[%s5037_s3 + $0x268] sm:$0xff] }
  0x5a   :  { %724 = vmatprep.subr.mxu0 %v97_v61  ;;  %v2240_v61 = vld [vmem:[%s5037_s3 + $0x250] sm:$0xff] }
  0x5b   :  { %423 = vmatmul.mubr.f32.gmra.mxu0 %v3094_v62  ;;  %632 = vmatmul.mubr.f32.gmra.mxu1 %v3094_v62 }
  0x5c   :  { %2168 = vmatprep.mubr.msk.f32.mxu0 %vm188_vm1, %v3099_v63  ;;  %2194 = vmatprep.mubr.msk.f32.mxu1 %vm188_vm1, %v3099_v63 }
  0x5d   :  { %725 = vmatpush1.msra.mxu0 %v96_v0  ;;  %v2235_v0 = vld [vmem:[%s5037_s3 + $0x228] sm:$0xff] }
  0x5e   :  { %726 = vmatprep.subr.mxu0 %v91_v1  ;;  %v2233_v1 = vld [vmem:[%s5037_s3 + $0x218] sm:$0xff] }
  0x5f   :  { %429 = vmatmul.mubr.f32.gmra.mxu0 %v3116_v2  ;;  %638 = vmatmul.mubr.f32.gmra.mxu1 %v3116_v2 }
  0x60   :  { %2169 = vmatprep.mubr.msk.f32.mxu0 %vm188_vm1, %v3121_v3  ;;  %2195 = vmatprep.mubr.msk.f32.mxu1 %vm188_vm1, %v3121_v3 }
  0x61   :  { %727 = vmatpush1.msra.mxu0 %v90_v4  ;;  %v2323_v4 = vld [vmem:[%s5037_s3 + $0x4e8] sm:$0xff] }
  0x62   :  { %728 = vmatprep.subr.mxu0 %v85_v5  ;;  %v2231_v5 = vld [vmem:[%s5037_s3 + $0x208] sm:$0xff] }
  0x63   :  { %435 = vmatmul.mubr.f32.gmra.mxu0 %v3138_v6  ;;  %644 = vmatmul.mubr.f32.gmra.mxu1 %v3138_v6 }
  0x64   :  { %2170 = vmatprep.mubr.msk.f32.mxu0 %vm188_vm1, %v3143_v8  ;;  %2196 = vmatprep.mubr.msk.f32.mxu1 %vm188_vm1, %v3143_v8 }
  0x65   :  { %729 = vmatpush1.msra.mxu0 %v84_v10  ;;  %v2322_v10 = vld [vmem:[%s5037_s3 + $0x4e0] sm:$0xff] }
  0x66   :  { %2204 = vmatprep.subr.msk.mxu0 %vm261_vm0, %v187_v12  ;;  %v2320_v12 = vld [vmem:[%s5037_s3 + $0x4d0] sm:$0xff] }
  0x67   :  { %441 = vmatmul.mubr.f32.gmra.mxu0 %v3160_v13  ;;  %650 = vmatmul.mubr.f32.gmra.mxu1 %v3160_v13 }
  0x68   :  { %2171 = vmatprep.mubr.msk.f32.mxu0 %vm188_vm1, %v3165_v16  ;;  %2197 = vmatprep.mubr.msk.f32.mxu1 %vm188_vm1, %v3165_v16 }
  0x69   :  { %2205 = vmatpush2.msk.msra.mxu0 %vm261_vm0, %v186_v17  ;;  %v2293_v17 = vld [vmem:[%s5037_s3 + $0x3f8] sm:$0xff] }
  0x6a   :  { %760 = vmatprep.subr.mxu0 %v181_v20  ;;  %v2292_v20 = vld [vmem:[%s5037_s3 + $0x3f0] sm:$0xff] }
  0x6b   :  { %447 = vmatmul.mubr.f32.gmra.mxu0 %v3183_v21  ;;  %656 = vmatmul.mubr.f32.gmra.mxu1 %v3183_v21 }
  0x6c   :  { %2172 = vmatprep.mubr.msk.f32.mxu0 %vm188_vm1, %v3188_v24  ;;  %2198 = vmatprep.mubr.msk.f32.mxu1 %vm188_vm1, %v3188_v24 }
  0x6d   :  { %761 = vmatpush2.msra.mxu0 %v180_v25  ;;  %v2318_v25 = vld [vmem:[%s5037_s3 + $0x4c0] sm:$0xff] }
  0x6f   :  { %453 = vmatmul.mubr.f32.gmra.mxu0 %v3203_v28  ;;  %662 = vmatmul.mubr.f32.gmra.mxu1 %v3203_v28 }
  0x70   :  { %2173 = vmatprep.mubr.msk.f32.mxu0 %vm188_vm1, %v3208_v29  ;;  %2199 = vmatprep.mubr.msk.f32.mxu1 %vm188_vm1, %v3208_v29 }
  0x73   :  { %459 = vmatmul.mubr.f32.gmra.mxu0 %v3219_v32  ;;  %668 = vmatmul.mubr.f32.gmra.mxu1 %v3219_v32 }
  0x74   :  { %2174 = vmatprep.mubr.msk.f32.mxu0 %vm188_vm1, %v3224_v33  ;;  %2200 = vmatprep.mubr.msk.f32.mxu1 %vm188_vm1, %v3224_v33 }
  0x77   :  { %465 = vmatmul.mubr.f32.gmra.mxu0 %v3235_v36  ;;  %674 = vmatmul.mubr.f32.gmra.mxu1 %v3235_v36 }
  0x78   :  { %2175 = vmatprep.mubr.msk.f32.mxu0 %vm188_vm1, %v3240_v37  ;;  %2201 = vmatprep.mubr.msk.f32.mxu1 %vm188_vm1, %v3240_v37 }
  0x7b   :  { %471 = vmatmul.mubr.f32.gmra.mxu0 %v3251_v40  ;;  %680 = vmatmul.mubr.f32.gmra.mxu1 %v3251_v40 }
  0x7c   :  { %2176 = vmatprep.mubr.msk.f32.mxu0 %vm188_vm1, %v3256_v41  ;;  %2202 = vmatprep.mubr.msk.f32.mxu1 %vm188_vm1, %v3256_v41 }
  0x7f   :  { %477 = vmatmul.mubr.f32.gmra.mxu0 %v3267_v44  ;;  %686 = vmatmul.mubr.f32.gmra.mxu1 %v3267_v44 }
  0x80   :  { %2177 = vmatprep.mubr.msk.f32.mxu0 %vm188_vm1, %v3272_v45  ;;  %2203 = vmatprep.mubr.msk.f32.mxu1 %vm188_vm1, %v3272_v45 }
  0x83   :  { %483 = vmatmul.mubr.f32.gmra.mxu0 %v3283_v48  ;;  %692 = vmatmul.mubr.f32.gmra.mxu1 %v3283_v48 }
  0x84   :  { %2206 = vmatprep.mubr.msk.f32.mxu0 %vm188_vm1, %v2791_v7  ;;  %v2258_v7 = vld [vmem:[%s5037_s3 + $0x2e0] sm:$0xff] }
  0x85   :  { %1211 = vmatpush1.msra.mxu1 %v2258_v7  ;;  %v2315_v7 = vld [vmem:[%s5037_s3 + $0x4a8] sm:$0xff] }
  0x87   :  { %763 = vmatmul.mubr.f32.vlgmr.msra.gmra.mxu0 %v2801_v9  ;;  %v2257_v9 = vld [vmem:[%s5037_s3 + $0x2d8] sm:$0xff] }
  0x88   :  { %2207 = vmatprep.mubr.msk.f32.mxu0 %vm188_vm1, %v2811_v11  ;;  %v2256_v11 = vld [vmem:[%s5037_s3 + $0x2d0] sm:$0xff]  ;;  %1212 = vmatprep.subr.mxu1 %v2257_v9 }
  0x89   :  { %1213 = vmatpush1.msra.mxu1 %v2256_v11  ;;  %v2288_v9 = vld [vmem:[%s5037_s3 + $0x3d0] sm:$0xff]  ;;  %v2313_v11 = vld [vmem:[%s5037_s3 + $0x498] sm:$0xff] }
  0x8b   :  { %769 = vmatmul.mubr.f32.gmra.mxu0 %v2828_v14  ;;  %v2255_v14 = vld [vmem:[%s5037_s3 + $0x2c8] sm:$0xff] }
  0x8c   :  { %2208 = vmatprep.mubr.msk.f32.mxu0 %vm188_vm1, %v2835_v15  ;;  %1214 = vmatprep.subr.mxu1 %v2255_v14  ;;  %v2254_v15 = vld [vmem:[%s5037_s3 + $0x2c0] sm:$0xff]  ;;  %v2287_v14 = vld [vmem:[%s5037_s3 + $0x3c8] sm:$0xff] }
  0x8d   :  { %1215 = vmatpush1.msra.mxu1 %v2254_v15  ;;  %v2312_v15 = vld [vmem:[%s5037_s3 + $0x490] sm:$0xff] }
  0x8f   :  { %775 = vmatmul.mubr.f32.gmra.mxu0 %v2852_v18  ;;  %v2253_v18 = vld [vmem:[%s5037_s3 + $0x2b8] sm:$0xff] }
  0x90   :  { %2209 = vmatprep.mubr.msk.f32.mxu0 %vm188_vm1, %v2857_v19  ;;  %v2252_v19 = vld [vmem:[%s5037_s3 + $0x2b0] sm:$0xff]  ;;  %1216 = vmatprep.subr.mxu1 %v2253_v18  ;;  %v2310_v18 = vld [vmem:[%s5037_s3 + $0x480] sm:$0xff] }
  0x91   :  { %1217 = vmatpush1.msra.mxu1 %v2252_v19  ;;  %v2309_v19 = vld [vmem:[%s5037_s3 + $0x478] sm:$0xff] }
  0x92   :  { %1218 = vmatprep.subr.mxu1 %v2251_v56  ;;  %v2285_v56 = vld [vmem:[%s5037_s3 + $0x3b8] sm:$0xff] }
  0x93   :  { %781 = vmatmul.mubr.f32.gmra.mxu0 %v2874_v22  ;;  %v2250_v22 = vld [vmem:[%s5037_s3 + $0x2a0] sm:$0xff] }
  0x94   :  { %2210 = vmatprep.mubr.msk.f32.mxu0 %vm188_vm1, %v2879_v23  ;;  %1219 = vmatpush1.msra.mxu1 %v2250_v22  ;;  %v2249_v23 = vld [vmem:[%s5037_s3 + $0x298] sm:$0xff]  ;;  %v2308_v22 = vld [vmem:[%s5037_s3 + $0x470] sm:$0xff] }
  0x95   :  { %1220 = vmatprep.subr.mxu1 %v2249_v23  ;;  %v2283_v23 = vld [vmem:[%s5037_s3 + $0x3a8] sm:$0xff] }
  0x96   :  { %1221 = vmatpush1.msra.mxu1 %v2248_v57  ;;  %v2306_v57 = vld [vmem:[%s5037_s3 + $0x460] sm:$0xff] }
  0x97   :  { %787 = vmatmul.mubr.f32.gmra.mxu0 %v2896_v26  ;;  %v2247_v26 = vld [vmem:[%s5037_s3 + $0x288] sm:$0xff] }
  0x98   :  { %2211 = vmatprep.mubr.msk.f32.mxu0 %vm188_vm1, %v2901_v27  ;;  %1222 = vmatprep.subr.mxu1 %v2247_v26  ;;  %v2246_v27 = vld [vmem:[%s5037_s3 + $0x280] sm:$0xff]  ;;  %v2305_v26 = vld [vmem:[%s5037_s3 + $0x458] sm:$0xff] }
  0x99   :  { %1223 = vmatpush1.msra.mxu1 %v2246_v27  ;;  %v2282_v27 = vld [vmem:[%s5037_s3 + $0x3a0] sm:$0xff] }
  0x9b   :  { %793 = vmatmul.mubr.f32.gmra.mxu0 %v2918_v30  ;;  %v2245_v30 = vld [vmem:[%s5037_s3 + $0x278] sm:$0xff] }
  0x9c   :  { %2212 = vmatprep.mubr.msk.f32.mxu0 %vm188_vm1, %v2923_v31  ;;  %v2244_v31 = vld [vmem:[%s5037_s3 + $0x270] sm:$0xff]  ;;  %1224 = vmatprep.subr.mxu1 %v2245_v30  ;;  %v2281_v30 = vld [vmem:[%s5037_s3 + $0x398] sm:$0xff] }
  0x9d   :  { %1225 = vmatpush1.msra.mxu1 %v2244_v31  ;;  %v2302_v31 = vld [vmem:[%s5037_s3 + $0x440] sm:$0xff] }
  0x9e   :  { %1226 = vmatprep.subr.mxu1 %v2243_v60  ;;  %v2280_v60 = vld [vmem:[%s5037_s3 + $0x390] sm:$0xff] }
  0x9f   :  { %799 = vmatmul.mubr.f32.gmra.mxu0 %v2940_v34  ;;  %v2242_v34 = vld [vmem:[%s5037_s3 + $0x260] sm:$0xff] }
  0xa0   :  { %2213 = vmatprep.mubr.msk.f32.mxu0 %vm188_vm1, %v2945_v35  ;;  %1227 = vmatpush1.msra.mxu1 %v2242_v34  ;;  %v2241_v35 = vld [vmem:[%s5037_s3 + $0x258] sm:$0xff] }
  0xa1   :  { %1228 = vmatprep.subr.mxu1 %v2241_v35  ;;  %v2301_v34 = vld [vmem:[%s5037_s3 + $0x438] sm:$0xff]  ;;  %v2279_v35 = vld [vmem:[%s5037_s3 + $0x388] sm:$0xff] }
  0xa2   :  { %1229 = vmatpush1.msra.mxu1 %v2240_v61  ;;  %v2298_v61 = vld [vmem:[%s5037_s3 + $0x420] sm:$0xff] }
  0xa3   :  { %805 = vmatmul.mubr.f32.gmra.mxu0 %v2962_v38  ;;  %v2239_v38 = vld [vmem:[%s5037_s3 + $0x248] sm:$0xff] }
  0xa4   :  { %2214 = vmatprep.mubr.msk.f32.mxu0 %vm188_vm1, %v2967_v39  ;;  %1230 = vmatprep.subr.mxu1 %v2239_v38  ;;  %v2238_v39 = vld [vmem:[%s5037_s3 + $0x240] sm:$0xff] }
  0xa5   :  { %1231 = vmatpush1.msra.mxu1 %v2238_v39  ;;  %v2278_v38 = vld [vmem:[%s5037_s3 + $0x380] sm:$0xff]  ;;  %v2297_v39 = vld [vmem:[%s5037_s3 + $0x418] sm:$0xff] }
  0xa7   :  { %811 = vmatmul.mubr.f32.gmra.mxu0 %v2984_v42  ;;  %v2237_v42 = vld [vmem:[%s5037_s3 + $0x238] sm:$0xff] }
  0xa8   :  { %2215 = vmatprep.mubr.msk.f32.mxu0 %vm188_vm1, %v2989_v43  ;;  %v2236_v43 = vld [vmem:[%s5037_s3 + $0x230] sm:$0xff]  ;;  %1232 = vmatprep.subr.mxu1 %v2237_v42  ;;  %v2294_v42 = vld [vmem:[%s5037_s3 + $0x400] sm:$0xff] }
  0xa9   :  { %1233 = vmatpush1.msra.mxu1 %v2236_v43  ;;  %v2277_v43 = vld [vmem:[%s5037_s3 + $0x378] sm:$0xff] }
  0xaa   :  { %1234 = vmatprep.subr.mxu1 %v2235_v0  ;;  %v2357_v0 = vld [vmem:[%s5037_s3 + $0x5f8] sm:$0xff] }
  0xab   :  { %817 = vmatmul.mubr.f32.gmra.mxu0 %v3006_v46  ;;  %v2234_v46 = vld [vmem:[%s5037_s3 + $0x220] sm:$0xff] }
  0xac   :  { %2216 = vmatprep.mubr.msk.f32.mxu0 %vm188_vm1, %v3011_v47  ;;  %1235 = vmatpush1.msra.mxu1 %v2234_v46  ;;  %v2325_v47 = vld [vmem:[%s5037_s3 + $0x4f8] sm:$0xff]  ;;  %v2274_v46 = vld [vmem:[%s5037_s3 + $0x360] sm:$0xff] }
  0xad   :  { %1451 = vmatprep.subr.mxu0 %v2325_v47  ;;  %1236 = vmatprep.subr.mxu1 %v2233_v1  ;;  %v2356_v47 = vld [vmem:[%s5037_s3 + $0x5f0] sm:$0xff]  ;;  %v2273_v1 = vld [vmem:[%s5037_s3 + $0x358] sm:$0xff] }
  0xaf   :  { %823 = vmatmul.mubr.f32.gmra.mxu0 %v3028_v50  ;;  %v2232_v50 = vld [vmem:[%s5037_s3 + $0x210] sm:$0xff] }
  0xb0   :  { %2217 = vmatprep.mubr.msk.f32.mxu0 %vm188_vm1, %v3033_v51  ;;  %v2324_v51 = vld [vmem:[%s5037_s3 + $0x4f0] sm:$0xff]  ;;  %1237 = vmatpush1.msra.mxu1 %v2232_v50  ;;  %v2355_v50 = vld [vmem:[%s5037_s3 + $0x5e8] sm:$0xff] }
  0xb1   :  { %1452 = vmatpush1.msra.mxu0 %v2324_v51  ;;  %1238 = vmatprep.subr.mxu1 %v2231_v5  ;;  %v2272_v51 = vld [vmem:[%s5037_s3 + $0x350] sm:$0xff]  ;;  %v2271_v5 = vld [vmem:[%s5037_s3 + $0x348] sm:$0xff] }
  0xb2   :  { %1453 = vmatprep.subr.mxu0 %v2323_v4  ;;  %v2352_v4 = vld [vmem:[%s5037_s3 + $0x5d0] sm:$0xff] }
  0xb3   :  { %829 = vmatmul.mubr.f32.gmra.mxu0 %v3050_v54  ;;  %v2230_v54 = vld [vmem:[%s5037_s3 + $0x200] sm:$0xff] }
  0xb4   :  { %2218 = vmatprep.mubr.msk.f32.mxu0 %vm188_vm1, %v3055_v55  ;;  %v2321_v55 = vld [vmem:[%s5037_s3 + $0x4d8] sm:$0xff]  ;;  %1239 = vmatpush1.msra.mxu1 %v2230_v54  ;;  %v2350_v54 = vld [vmem:[%s5037_s3 + $0x5c0] sm:$0xff] }
  0xb5   :  { %1454 = vmatpush1.msra.mxu0 %v2322_v10  ;;  %1240 = vmatprep.subr.mxu1 %v2293_v17  ;;  %v2351_v10 = vld [vmem:[%s5037_s3 + $0x5c8] sm:$0xff] }
  0xb6   :  { %1455 = vmatprep.subr.mxu0 %v2321_v55  ;;  %1241 = vmatpush2.msra.mxu1 %v2292_v20  ;;  %v2349_v55 = vld [vmem:[%s5037_s3 + $0x5b8] sm:$0xff]  ;;  %v2267_v17 = vld [vmem:[%s5037_s3 + $0x328] sm:$0xff]  ;;  %v2266_v20 = vld [vmem:[%s5037_s3 + $0x320] sm:$0xff] }
  0xb7   :  { %835 = vmatmul.mubr.f32.gmra.mxu0 %v3072_v58  ;;  %v2319_v58 = vld [vmem:[%s5037_s3 + $0x4c8] sm:$0xff] }
  0xb8   :  { %2219 = vmatprep.mubr.msk.f32.mxu0 %vm188_vm1, %v3077_v59  ;;  %1456 = vmatpush1.msra.mxu0 %v2320_v12  ;;  %v2291_v59 = vld [vmem:[%s5037_s3 + $0x3e8] sm:$0xff]  ;;  %v2268_v12 = vld [vmem:[%s5037_s3 + $0x330] sm:$0xff] }
  0xb9   :  { %1457 = vmatprep.subr.mxu0 %v2319_v58  ;;  %1242 = vmatprep.subr.mxu1 %v2291_v59  ;;  %v2265_v58 = vld [vmem:[%s5037_s3 + $0x318] sm:$0xff]  ;;  %v2264_v59 = vld [vmem:[%s5037_s3 + $0x310] sm:$0xff] }
  0xba   :  { %1458 = vmatpush1.msra.mxu0 %v2318_v25  ;;  %1243 = vmatpush2.msra.mxu1 %v2290_v53  ;;  %v2346_v25 = vld [vmem:[%s5037_s3 + $0x5a0] sm:$0xff] }
  0xbb   :  { %841 = vmatmul.mubr.f32.gmra.mxu0 %v3094_v62  ;;  %1459 = vmatprep.subr.mxu0 %v2317_v49  ;;  %v2289_v62 = vld [vmem:[%s5037_s3 + $0x3d8] sm:$0xff]  ;;  %v2262_v53 = vld [vmem:[%s5037_s3 + $0x300] sm:$0xff] }
  0xbc   :  { %2220 = vmatprep.mubr.msk.f32.mxu0 %vm188_vm1, %v3099_v63  ;;  %1460 = vmatpush1.msra.mxu0 %v2316_v52  ;;  %v2314_v63 = vld [vmem:[%s5037_s3 + $0x4a0] sm:$0xff]  ;;  %v2345_v49 = vld [vmem:[%s5037_s3 + $0x598] sm:$0xff]  ;;  %v2263_v52 = vld [vmem:[%s5037_s3 + $0x308] sm:$0xff] }
  0xbd   :  { %1461 = vmatprep.subr.mxu0 %v2315_v7  ;;  %1244 = vmatprep.subr.mxu1 %v2289_v62  ;;  %v2343_v7 = vld [vmem:[%s5037_s3 + $0x588] sm:$0xff]  ;;  %v1110_v62 = vld [vmem:[%s5037_s3 + $0xf8] sm:$0xff] }
  0xbe   :  { %1462 = vmatpush1.msra.mxu0 %v2314_v63  ;;  %1245 = vmatpush2.msra.mxu1 %v2288_v9 }
  0xbf   :  { %847 = vmatmul.mubr.f32.gmra.mxu0 %v3116_v2  ;;  %1463 = vmatprep.subr.mxu0 %v2313_v11  ;;  %v2311_v2 = vld [vmem:[%s5037_s3 + $0x488] sm:$0xff]  ;;  %v2342_v11 = vld [vmem:[%s5037_s3 + $0x580] sm:$0xff] }
  0xc0   :  { %2221 = vmatprep.mubr.msk.f32.mxu0 %vm188_vm1, %v3121_v3  ;;  %1246 = vmatprep.subr.mxu1 %v2287_v14  ;;  %v2286_v3 = vld [vmem:[%s5037_s3 + $0x3c0] sm:$0xff] }
  0xc1   :  { %1247 = vmatpush2.msra.mxu1 %v2286_v3  ;;  %1464 = vmatpush1.msra.mxu0 %v2312_v15  ;;  %v2341_v15 = vld [vmem:[%s5037_s3 + $0x578] sm:$0xff] }
  0xc2   :  { %1465 = vmatprep.subr.mxu0 %v2311_v2  ;;  %1248 = vmatprep.subr.mxu1 %v2285_v56 }
  0xc3   :  { %853 = vmatmul.mubr.f32.gmra.mxu0 %v3138_v6  ;;  %v2284_v6 = vld [vmem:[%s5037_s3 + $0x3b0] sm:$0xff] }
  0xc4   :  { %2222 = vmatprep.mubr.msk.f32.mxu0 %vm188_vm1, %v3143_v8  ;;  %1466 = vmatpush1.msra.mxu0 %v2310_v18  ;;  %v2307_v8 = vld [vmem:[%s5037_s3 + $0x468] sm:$0xff]  ;;  %v2340_v18 = vld [vmem:[%s5037_s3 + $0x570] sm:$0xff] }
  0xc5   :  { %1249 = vmatpush2.msra.mxu1 %v2284_v6  ;;  %1467 = vmatprep.subr.mxu0 %v2309_v19  ;;  %v2339_v19 = vld [vmem:[%s5037_s3 + $0x568] sm:$0xff] }
  0xc6   :  { %1468 = vmatpush1.msra.mxu0 %v2308_v22  ;;  %1250 = vmatprep.subr.mxu1 %v2283_v23  ;;  %v2338_v22 = vld [vmem:[%s5037_s3 + $0x560] sm:$0xff]  ;;  %v2337_v23 = vld [vmem:[%s5037_s3 + $0x558] sm:$0xff] }
  0xc7   :  { %859 = vmatmul.mubr.f32.gmra.mxu0 %v3160_v13  ;;  %1469 = vmatprep.subr.mxu0 %v2307_v8  ;;  %v2304_v13 = vld [vmem:[%s5037_s3 + $0x450] sm:$0xff] }
  0xc8   :  { %2223 = vmatprep.mubr.msk.f32.mxu0 %vm188_vm1, %v3165_v16  ;;  %1470 = vmatpush1.msra.mxu0 %v2306_v57  ;;  %v2303_v16 = vld [vmem:[%s5037_s3 + $0x448] sm:$0xff] }
  0xc9   :  { %1251 = vmatpush2.msra.mxu1 %v2282_v27  ;;  %1471 = vmatprep.subr.mxu0 %v2305_v26  ;;  %v2336_v27 = vld [vmem:[%s5037_s3 + $0x550] sm:$0xff] }
  0xca   :  { %1472 = vmatpush1.msra.mxu0 %v2304_v13  ;;  %1252 = vmatprep.subr.mxu1 %v2281_v30  ;;  %v2335_v13 = vld [vmem:[%s5037_s3 + $0x548] sm:$0xff] }
  0xcb   :  { %865 = vmatmul.mubr.f32.gmra.mxu0 %v3183_v21  ;;  %1473 = vmatprep.subr.mxu0 %v2303_v16  ;;  %v2300_v21 = vld [vmem:[%s5037_s3 + $0x430] sm:$0xff] }
  0xcc   :  { %2224 = vmatprep.mubr.msk.f32.mxu0 %vm188_vm1, %v3188_v24  ;;  %1474 = vmatpush1.msra.mxu0 %v2302_v31  ;;  %v2299_v24 = vld [vmem:[%s5037_s3 + $0x428] sm:$0xff]  ;;  %v2334_v31 = vld [vmem:[%s5037_s3 + $0x540] sm:$0xff] }
  0xcd   :  { %1253 = vmatpush2.msra.mxu1 %v2280_v60  ;;  %1475 = vmatprep.subr.mxu0 %v2301_v34  ;;  %v2333_v34 = vld [vmem:[%s5037_s3 + $0x538] sm:$0xff] }
  0xce   :  { %1476 = vmatpush1.msra.mxu0 %v2300_v21  ;;  %1254 = vmatprep.subr.mxu1 %v2279_v35  ;;  %v2332_v35 = vld [vmem:[%s5037_s3 + $0x530] sm:$0xff] }
  0xcf   :  { %871 = vmatmul.mubr.f32.gmra.mxu0 %v3203_v28  ;;  %1477 = vmatprep.subr.mxu0 %v2299_v24  ;;  %v2296_v28 = vld [vmem:[%s5037_s3 + $0x410] sm:$0xff]  ;;  %v2331_v24 = vld [vmem:[%s5037_s3 + $0x528] sm:$0xff] }
  0xd0   :  { %2225 = vmatprep.mubr.msk.f32.mxu0 %vm188_vm1, %v3208_v29  ;;  %1255 = vmatpush2.msra.mxu1 %v2278_v38  ;;  %v2295_v29 = vld [vmem:[%s5037_s3 + $0x408] sm:$0xff]  ;;  %v2330_v38 = vld [vmem:[%s5037_s3 + $0x520] sm:$0xff] }
  0xd1   :  { %1478 = vmatpush1.msra.mxu0 %v2298_v61  ;;  %1256 = vmatprep.subr.mxu1 %v2277_v43 }
  0xd2   :  { %1479 = vmatprep.subr.mxu0 %v2297_v39  ;;  %v2329_v39 = vld [vmem:[%s5037_s3 + $0x518] sm:$0xff] }
  0xd3   :  { %877 = vmatmul.mubr.f32.gmra.mxu0 %v3219_v32  ;;  %v2276_v32 = vld [vmem:[%s5037_s3 + $0x370] sm:$0xff] }
  0xd4   :  { %2226 = vmatprep.mubr.msk.f32.mxu0 %vm188_vm1, %v3224_v33  ;;  %1480 = vmatpush1.msra.mxu0 %v2296_v28  ;;  %v2275_v33 = vld [vmem:[%s5037_s3 + $0x368] sm:$0xff] }
  0xd5   :  { %1481 = vmatprep.subr.mxu0 %v2295_v29  ;;  %1257 = vmatpush2.msra.mxu1 %v2276_v32  ;;  %v2328_v29 = vld [vmem:[%s5037_s3 + $0x510] sm:$0xff]  ;;  %v2453_v32 = vld [vmem:[%s5037_s3 + $0x8f8] sm:$0xff] }
  0xd6   :  { %1482 = vmatpush1.msra.mxu0 %v2294_v42  ;;  %1258 = vmatprep.subr.mxu1 %v2275_v33  ;;  %v2327_v42 = vld [vmem:[%s5037_s3 + $0x508] sm:$0xff] }
  0xd7   :  { %883 = vmatmul.mubr.f32.gmra.mxu0 %v3235_v36  ;;  %1483 = vmatprep.subr.mxu0 %v2357_v0  ;;  %v2354_v36 = vld [vmem:[%s5037_s3 + $0x5e0] sm:$0xff] }
  0xd8   :  { %2227 = vmatprep.mubr.msk.f32.mxu0 %vm188_vm1, %v3240_v37  ;;  %1259 = vmatpush2.msra.mxu1 %v2274_v46  ;;  %v2353_v37 = vld [vmem:[%s5037_s3 + $0x5d8] sm:$0xff]  ;;  %v2326_v0 = vld [vmem:[%s5037_s3 + $0x500] sm:$0xff] }
  0xd9   :  { %1484 = vmatpush2.msra.mxu0 %v2356_v47  ;;  %1260 = vmatprep.subr.mxu1 %v2273_v1 }
  0xda   :  { %1485 = vmatprep.subr.mxu0 %v2355_v50  ;;  %1261 = vmatpush2.msra.mxu1 %v2272_v51 }
  0xdb   :  { %889 = vmatmul.mubr.f32.gmra.mxu0 %v3251_v40  ;;  %v2270_v40 = vld [vmem:[%s5037_s3 + $0x340] sm:$0xff]  ;;  %1262 = vmatprep.subr.mxu1 %v2271_v5 }
  0xdc   :  { %2228 = vmatprep.mubr.msk.f32.mxu0 %vm188_vm1, %v3256_v41  ;;  %1486 = vmatpush2.msra.mxu0 %v2354_v36  ;;  %v2269_v41 = vld [vmem:[%s5037_s3 + $0x338] sm:$0xff] }
  0xdd   :  { %1487 = vmatprep.subr.mxu0 %v2353_v37  ;;  %1263 = vmatpush2.msra.mxu1 %v2270_v40 }
  0xde   :  { %1488 = vmatpush2.msra.mxu0 %v2352_v4  ;;  %1264 = vmatprep.subr.mxu1 %v2269_v41 }
  0xdf   :  { %895 = vmatmul.mubr.f32.gmra.mxu0 %v3267_v44  ;;  %1489 = vmatprep.subr.mxu0 %v2351_v10  ;;  %v2348_v44 = vld [vmem:[%s5037_s3 + $0x5b0] sm:$0xff] }
  0xe0   :  { %2229 = vmatprep.mubr.msk.f32.mxu0 %vm188_vm1, %v3272_v45  ;;  %1490 = vmatpush2.msra.mxu0 %v2350_v54  ;;  %v2347_v45 = vld [vmem:[%s5037_s3 + $0x5a8] sm:$0xff] }
  0xe1   :  { %1491 = vmatprep.subr.mxu0 %v2349_v55  ;;  %1265 = vmatpush2.msra.mxu1 %v2268_v12 }
  0xe2   :  { %1266 = vmatprep.subr.mxu1 %v2267_v17  ;;  %1492 = vmatpush2.msra.mxu0 %v2348_v44 }
  0xe3   :  { %901 = vmatmul.mubr.f32.gmra.mxu0 %v3283_v48  ;;  %1267 = vmatpush2.msra.mxu1 %v2266_v20  ;;  %v2344_v48 = vld [vmem:[%s5037_s3 + $0x590] sm:$0xff] }
  0xe4   :  { %1493 = vmatprep.subr.mxu0 %v2347_v45  ;;  %1268 = vmatprep.subr.mxu1 %v2265_v58 }
  0xe5   :  { %1494 = vmatpush2.msra.mxu0 %v2346_v25  ;;  %1269 = vmatpush2.msra.mxu1 %v2264_v59 }
  0xe6   :  { %1495 = vmatprep.subr.mxu0 %v2345_v49  ;;  %1270 = vmatprep.subr.mxu1 %v2263_v52 }
  0xe7   :  { %v3695_v63 = vpop.f32.mrf.mxu0  ;;  %v3697_v9 = vpop.f32.mrf.mxu1  ;;  %1496 = vmatpush2.msra.mxu0 %v2344_v48  ;;  %1271 = vmatpush2.msra.mxu1 %v2262_v53 }
  0xe8   :  { %1497 = vmatprep.subr.mxu0 %v2343_v7  ;;  %1297 = vmatprep.subr.mxu1 %v1110_v62 }
  0xe9   :  { %v3707_v2 = vpop.f32.mrf.mxu0  ;;  %v3709_v3 = vpop.f32.mrf.mxu1  ;;  %1498 = vmatpush2.msra.mxu0 %v2342_v11 }
  0xea   :  { %1499 = vmatprep.subr.mxu0 %v2341_v15 }
  0xeb   :  { %v3717_v56 = vpop.f32.mrf.mxu0  ;;  %v3719_v6 = vpop.f32.mrf.mxu1  ;;  %1500 = vmatpush2.msra.mxu0 %v2340_v18 }
  0xec   :  { %1501 = vmatprep.subr.mxu0 %v2339_v19 }
  0xed   :  { %v3729_v57 = vpop.f32.mrf.mxu0  ;;  %v3731_v26 = vpop.f32.mrf.mxu1  ;;  %1502 = vmatpush2.msra.mxu0 %v2338_v22 }
  0xee   :  { %1503 = vmatprep.subr.mxu0 %v2337_v23 }
  0xef   :  { %v3739_v16 = vpop.f32.mrf.mxu0  ;;  %v3741_v30 = vpop.f32.mrf.mxu1  ;;  %1504 = vmatpush2.msra.mxu0 %v2336_v27 }
  0xf0   :  { %1505 = vmatprep.subr.mxu0 %v2335_v13 }
  0xf1   :  { %v3751_v21 = vpop.f32.mrf.mxu0  ;;  %1506 = vmatpush2.msra.mxu0 %v2334_v31  ;;  %v3783_v33 = vpop.f32.mrf.mxu1 }
  0xf2   :  { %1507 = vmatprep.subr.mxu0 %v2333_v34 }
  0xf3   :  { %v3759_v61 = vpop.f32.mrf.mxu0  ;;  %1508 = vmatpush2.msra.mxu0 %v2332_v35  ;;  %v3789_v1 = vpop.f32.mrf.mxu1 }
  0xf4   :  { %1509 = vmatprep.subr.mxu0 %v2331_v24 }
  0xf5   :  { %v3767_v28 = vpop.f32.mrf.mxu0  ;;  %1510 = vmatpush2.msra.mxu0 %v2330_v38  ;;  %v3795_v51 = vpop.f32.mrf.mxu1 }
  0xf6   :  { %1511 = vmatprep.subr.mxu0 %v2329_v39 }
  0xf7   :  { %v3775_v43 = vpop.f32.mrf.mxu0  ;;  %1512 = vmatpush2.msra.mxu0 %v2328_v29  ;;  %v3801_v5 = vpop.f32.mrf.mxu1 }
  0xf8   :  { %1513 = vmatprep.subr.mxu0 %v2327_v42 }
  0xf9   :  { %v3785_v46 = vpop.f32.mrf.mxu0  ;;  %1514 = vmatpush2.msra.mxu0 %v2326_v0  ;;  %v3807_v54 = vpop.f32.mrf.mxu1 }
  0xfa   :  { %1775 = vmatprep.subr.mxu0 %v2453_v32 }
  0xfb   :  { %v3787_v47 = vpop.f32.mrf.mxu0  ;;  %v3813_v12 = vpop.f32.mrf.mxu1 }
  0xfd   :  { %v3791_v50 = vpop.f32.mrf.mxu0  ;;  %v3819_v20 = vpop.f32.mrf.mxu1 }
  0xff   :  { %v3793_v36 = vpop.f32.mrf.mxu0  ;;  %v3825_v25 = vpop.f32.mrf.mxu1 }
 0x101   :  { %v3797_v37 = vpop.f32.mrf.mxu0  ;;  %v3831_v52 = vpop.f32.mrf.mxu1 }
 0x103   :  { %v3799_v4 = vpop.f32.mrf.mxu0  ;;  %v3837_v7 = vpop.f32.mrf.mxu1 }
 0x105   :  { %v3803_v10 = vpop.f32.mrf.mxu0  ;;  %v3843_v15 = vpop.f32.mrf.mxu1 }
 0x107   :  { %v3805_v40 = vpop.f32.mrf.mxu0  ;;  %v3849_v22 = vpop.f32.mrf.mxu1 }
 0x109   :  { %v3809_v41 = vpop.f32.mrf.mxu0  ;;  %v3855_v13 = vpop.f32.mrf.mxu1 }
 0x10b   :  { %v3811_v55 = vpop.f32.mrf.mxu0  ;;  %v3861_v35 = vpop.f32.mrf.mxu1 }
 0x10d   :  { %v3815_v17 = vpop.f32.mrf.mxu0  ;;  %v3867_v39 = vpop.f32.mrf.mxu1 }
 0x10f   :  { %v3817_v44 = vpop.f32.mrf.mxu0  ;;  %v3873_v0 = vpop.f32.mrf.mxu1 }
 0x111   :  { %v3821_v45 = vpop.f32.mrf.mxu0  ;;  %v3879_v8 = vpop.f32.mrf.mxu1 }
 0x113   :  { %v3823_v58 = vpop.f32.mrf.mxu0 }
 0x115   :  { %v3827_v59 = vpop.f32.mrf.mxu0 }
 0x117   :  { %v3829_v49 = vpop.f32.mrf.mxu0 }
 0x119   :  { %v3833_v48 = vpop.f32.mrf.mxu0 }
 0x11a   :  { %5045 = vst [vmem:[#allocation2_spill] sm:$0xff] %v3833_v48 }
 0x11b   :  { %v3835_v53 = vpop.f32.mrf.mxu0 }
 0x11c   :  { %5046 = vst [vmem:[#allocation3_spill] sm:$0xff] %v3835_v53  ;;  %v1037_v53 = vlaneseq }
 0x11d   :  { %v3839_v62 = vpop.f32.mrf.mxu0 }
 0x11e   :  { %5047 = vst [vmem:[#allocation4_spill] sm:$0xff] %v3839_v62 }
 0x11f   :  { %v3841_v11 = vpop.f32.mrf.mxu0 }
 0x120   :  { %5048 = vst [vmem:[#allocation5_spill] sm:$0xff] %v3841_v11 }
 0x121   :  { %v3845_v18 = vpop.f32.mrf.mxu0 }
 0x122   :  { %5049 = vst [vmem:[#allocation6_spill] sm:$0xff] %v3845_v18 }
 0x123   :  { %v3847_v19 = vpop.f32.mrf.mxu0 }
 0x124   :  { %5050 = vst [vmem:[#allocation7_spill] sm:$0xff] %v3847_v19 }
 0x125   :  { %v3851_v23 = vpop.f32.mrf.mxu0 }
 0x126   :  { %5051 = vst [vmem:[#allocation8_spill] sm:$0xff] %v3851_v23 }
 0x127   :  { %v3853_v27 = vpop.f32.mrf.mxu0 }
 0x128   :  { %5052 = vst [vmem:[#allocation9_spill] sm:$0xff] %v3853_v27 }
 0x129   :  { %v3857_v31 = vpop.f32.mrf.mxu0 }
 0x12a   :  { %5053 = vst [vmem:[#allocation10_spill] sm:$0xff] %v3857_v31 }
 0x12b   :  { %v3859_v34 = vpop.f32.mrf.mxu0 }
 0x12c   :  { %5054 = vst [vmem:[#allocation11_spill] sm:$0xff] %v3859_v34 }
 0x12d   :  { %v3863_v24 = vpop.f32.mrf.mxu0 }
 0x12e   :  { %5055 = vst [vmem:[#allocation12_spill] sm:$0xff] %v3863_v24  ;;  %v3885_v24 = vpop.f32.mrf.mxu1 }
 0x12f   :  { %v3865_v38 = vpop.f32.mrf.mxu0 }
 0x130   :  { %5056 = vst [vmem:[#allocation13_spill] sm:$0xff] %v3865_v38 }
 0x131   :  { %v3869_v29 = vpop.f32.mrf.mxu0 }
 0x132   :  { %5057 = vst [vmem:[#allocation14_spill] sm:$0xff] %v3869_v29  ;;  %v3891_v29 = vpop.f32.mrf.mxu1 }
 0x133   :  { %v3871_v42 = vpop.f32.mrf.mxu0 }
 0x134   :  { %5058 = vst [vmem:[#allocation15_spill] sm:$0xff] %v3871_v42 }
 0x135   :  { %v3875_v32 = vpop.f32.mrf.mxu0 }
 0x136   :  { %5059 = vst [vmem:[#allocation16_spill] sm:$0xff] %v3875_v32  ;;  %v3897_v32 = vpop.f32.mrf.mxu1 }
 0x137   :  { %v3877_v60 = vpop.f32.mrf.mxu0 }
 0x138   :  { %5060 = vst [vmem:[#allocation17_spill] sm:$0xff] %v3877_v60  ;;  %v3904_v19 = vpop.f32.mrf.mxu1 }
 0x139   :  { %v3881_v14 = vpop.f32.mrf.mxu0  ;;  %5069 = vst [vmem:[#allocation25_spill] sm:$0xff] %v3904_v19 }
 0x13a   :  { %5061 = vst [vmem:[#allocation18_spill] sm:$0xff] %v3881_v14  ;;  %v3911_v11 = vpop.f32.mrf.mxu1 }
 0x13b   :  { %v3883_v34 = vpop.f32.mrf.mxu0 }
 0x13c   :  { %5062 = vst [vmem:[#allocation19_spill] sm:$0xff] %v3883_v34  ;;  %v5068_v34 = vmax.f32 %v3695_v63, %v3697_v9  ;;  %v3920_v19 = vpop.f32.mrf.mxu1 }
 0x13d   :  { %v3887_v38 = vpop.f32.mrf.mxu0 }
 0x13e   :  { %5063 = vst [vmem:[#allocation20_spill] sm:$0xff] %v3887_v38 }
 0x13f   :  { %v3889_v31 = vpop.f32.mrf.mxu0 }
 0x140   :  { %5064 = vst [vmem:[#allocation21_spill] sm:$0xff] %v3889_v31  ;;  %v910_v31 = vmax.f32 %v3729_v57, %v3731_v26  ;;  %v5071_v57 = vmax.f32 %v3739_v16, %v3741_v30  ;;  %v915_v16 = vmax.f32 %v3775_v43, %v3801_v5  ;;  %v3932_v30 = vshrl.u32 %v1037_v53, 7 }
 0x141   :  { %v3893_v42 = vpop.f32.mrf.mxu0 }
 0x142   :  { %5065 = vst [vmem:[#allocation22_spill] sm:$0xff] %v3893_v42  ;;  %v5070_v42 = vmax.f32 %v3717_v56, %v3719_v6  ;;  %v1039_v5 = vsub.s32 0, %v3932_v30 }
 0x143   :  { %v3895_v23 = vpop.f32.mrf.mxu0 }
 0x144   :  { %5066 = vst [vmem:[#allocation23_spill] sm:$0xff] %v3895_v23 }
 0x145   :  { %v3899_v60 = vpop.f32.mrf.mxu0 }
 0x146   :  { %5067 = vst [vmem:[#allocation24_spill] sm:$0xff] %v3899_v60  ;;  %v908_v60 = vmax.f32 %v3707_v2, %v3709_v3  ;;  %v3926_v3 = vpop.f32.mrf.mxu1 }
 0x147   :  { %v764_v27 = vpop.f32.mrf.mxu0 }
 0x148   :  { %v955_v14 = vmax.f32 %v5068_v34, %v764_v27  ;;  %v912_v27 = vmax.f32 %v3751_v21, %v3783_v33  ;;  %v914_v33 = vmax.f32 %v3767_v28, %v3795_v51  ;;  %v918_v28 = vmax.f32 %v3791_v50, %v3819_v20 }
 0x149   :  { %v766_v38 = vpop.f32.mrf.mxu0 }
 0x14a   :  { %v956_v34 = vmax.f32 %v908_v60, %v766_v38  ;;  %v913_v60 = vmax.f32 %v3759_v61, %v3789_v1  ;;  %v3938_v38 = vpop.f32.mrf.mxu1  ;;  %v917_v61 = vmax.f32 %v3787_v47, %v3813_v12 }
 0x14b   :  { %v770_v18 = vpop.f32.mrf.mxu0 }
 0x14c   :  { %v957_v23 = vmax.f32 %v5070_v42, %v770_v18 }
 0x14d   :  { %v772_v62 = vpop.f32.mrf.mxu0 }
 0x14e   :  { %v1003_v48 = vmax.f32 %v955_v14, %v957_v23  ;;  %v958_v63 = vmax.f32 %v910_v31, %v772_v62 }
 0x14f   :  { %v776_v9 = vpop.f32.mrf.mxu0 }
 0x150   :  { %v959_v26 = vmax.f32 %v5071_v57, %v776_v9  ;;  %v1004_v6 = vmax.f32 %v956_v34, %v958_v63  ;;  %v3949_v34 = vpop.f32.mrf.mxu1 }
 0x151   :  { %v778_v56 = vpop.f32.mrf.mxu0 }
 0x152   :  { %v3922_v18 = vmax.f32 %v1003_v48, %v959_v26  ;;  %v960_v42 = vmax.f32 %v912_v27, %v778_v56  ;;  %v916_v48 = vmax.f32 %v3785_v46, %v3807_v54  ;;  %v1035_v46 = vld [vmem:[%s5038_s2] sm:$0x3]  ;;  %v1043_v27 = vsub.s32 1, %v3932_v30  ;;  %v3959_v20 = vpop.f32.mrf.mxu1 }
 0x153   :  { %v782_v2 = vpop.f32.mrf.mxu0  ;;  %v3953_v26 = vrot.slane %v1035_v46, %v1039_v5 }
 0x154   :  { %v3924_v14 = vmax.f32 %v1004_v6, %v960_v42  ;;  %v961_v23 = vmax.f32 %v913_v60, %v782_v2  ;;  %v3957_v50 = vrot.slane %v1035_v46, %v1043_v27  ;;  %v921_v60 = vmax.f32 %v3799_v4, %v3837_v7  ;;  %v1109_v4 = vld [vmem:[%s5037_s3 + $0xf0] sm:$0xff] }
 0x155   :  { %v784_v62 = vpop.f32.mrf.mxu0 }
 0x156   :  { %v962_v1 = vmax.f32 %v914_v33, %v784_v62  ;;  %v919_v62 = vmax.f32 %v3793_v36, %v3825_v25 }
 0x157   :  { %v788_v21 = vpop.f32.mrf.mxu0 }
 0x158   :  { %v963_v31 = vmax.f32 %v915_v16, %v788_v21  ;;  %v920_v21 = vmax.f32 %v3797_v37, %v3831_v52  ;;  %v923_v37 = vmax.f32 %v3805_v40, %v3849_v22  ;;  %v924_v40 = vmax.f32 %v3809_v41, %v3855_v13  ;;  %v1104_v41 = vld [vmem:[%s5037_s3 + $0xc8] sm:$0xff] }
 0x159   :  { %v790_v63 = vpop.f32.mrf.mxu0 }
 0x15a   :  { %v1005_v9 = vmax.f32 %v961_v23, %v963_v31  ;;  %v964_v43 = vmax.f32 %v916_v48, %v790_v63  ;;  %v922_v48 = vmax.f32 %v3803_v10, %v3843_v15  ;;  %v1108_v10 = vld [vmem:[%s5037_s3 + $0xe8] sm:$0xff] }
 0x15b   :  { %v794_v53 = vpop.f32.mrf.mxu0 }
 0x15c   :  { %v1006_v51 = vmax.f32 %v962_v1, %v964_v43  ;;  %v965_v54 = vmax.f32 %v917_v61, %v794_v53  ;;  %v3976_v61 = vpop.f32.mrf.mxu1  ;;  %v1106_v53 = vld [vmem:[%s5037_s3 + $0xd8] sm:$0xff] }
 0x15d   :  { %v796_v47 = vpop.f32.mrf.mxu0 }
 0x15e   :  { %v1021_v12 = vmax.f32 %v1005_v9, %v965_v54  ;;  %v966_v57 = vmax.f32 %v918_v28, %v796_v47  ;;  %v1107_v9 = vld [vmem:[%s5037_s3 + $0xe0] sm:$0xff]  ;;  %v3999_v28 = vpop.f32.mrf.mxu1 }
 0x15f   :  { %v800_v56 = vpop.f32.mrf.mxu0 }
 0x160   :  { %v1022_v6 = vmax.f32 %v1006_v51, %v966_v57  ;;  %v3962_v42 = vadd.f32 %v3953_v26, %v1021_v12  ;;  %v967_v23 = vmax.f32 %v919_v62, %v800_v56  ;;  %v1105_v51 = vld [vmem:[%s5037_s3 + $0xd0] sm:$0xff]  ;;  %v1103_v12 = vld [vmem:[%s5037_s3 + $0xc0] sm:$0xff]  ;;  %v1102_v56 = vld [vmem:[%s5037_s3 + $0xb8] sm:$0xff] }
 0x161   :  { %v802_v2 = vpop.f32.mrf.mxu0  ;;  %v1101_v62 = vld [vmem:[%s5037_s3 + $0xb0] sm:$0xff] }
 0x162   :  { %v3969_v16 = vadd.f32 %v3957_v50, %v1022_v6  ;;  %v1065_v36 = vmax.f32 %v3962_v42, 0.0  ;;  %v968_v52 = vmax.f32 %v920_v21, %v802_v2  ;;  %v4013_v6 = vpop.f32.mrf.mxu1  ;;  %v927_v21 = vmax.f32 %v3817_v44, %v3873_v0  ;;  %v2458_v42 = vld [vmem:[%s5037_s3 + $0x920] sm:$0xff] }
 0x163   :  { %v806_v33 = vpop.f32.mrf.mxu0  ;;  %v928_v44 = vmax.f32 %v3821_v45, %v3879_v8  ;;  %v1097_v45 = vld [vmem:[%s5037_s3 + $0x90] sm:$0xff] }
 0x164   :  { %v969_v31 = vmax.f32 %v921_v60, %v806_v33  ;;  %v1066_v63 = vmax.f32 %v3969_v16, 0.0  ;;  %v925_v60 = vmax.f32 %v3811_v55, %v3861_v35  ;;  %v1100_v33 = vld [vmem:[%s5037_s3 + $0xa8] sm:$0xff]  ;;  %v1099_v55 = vld [vmem:[%s5037_s3 + $0xa0] sm:$0xff]  ;;  %v2461_v16 = vld [vmem:[%s5037_s3 + $0x938] sm:$0xff] }
 0x165   :  { %v808_v25 = vpop.f32.mrf.mxu0 }
 0x166   :  { %v1007_v7 = vmax.f32 %v967_v23, %v969_v31  ;;  %v970_v1 = vmax.f32 %v922_v48, %v808_v25  ;;  %1272 = vmatprep.mubr.f32.mxu1 %v1066_v63  ;;  %v926_v31 = vmax.f32 %v3815_v17, %v3867_v39  ;;  %v929_v17 = vmax.f32 %v3823_v58, %v3885_v24  ;;  %v4041_v39 = vpop.f32.mrf.mxu1  ;;  %v2452_v58 = vld [vmem:[%s5037_s3 + $0x8f0] sm:$0xff] }
 0x167   :  { %v812_v15 = vpop.f32.mrf.mxu0  ;;  %1273 = vmatmul.mubr.f32.vlgmr.msra.gmra.mxu1 %v1065_v36 }
 0x168   :  { %v1008_v22 = vmax.f32 %v968_v52, %v970_v1  ;;  %v971_v43 = vmax.f32 %v923_v37, %v812_v15  ;;  %1298 = vmatpush1.msra.mxu1 %v1109_v4  ;;  %v1098_v37 = vld [vmem:[%s5037_s3 + $0x98] sm:$0xff]  ;;  %v1096_v15 = vld [vmem:[%s5037_s3 + $0x88] sm:$0xff] }
 0x169   :  { %1299 = vmatprep.subr.mxu1 %v1108_v10  ;;  %v814_v46 = vpop.f32.mrf.mxu0 }
 0x16a   :  { %v1023_v54 = vmax.f32 %v1007_v7, %v971_v43  ;;  %v972_v47 = vmax.f32 %v924_v40, %v814_v46  ;;  %1300 = vmatpush1.msra.mxu1 %v1107_v9  ;;  %v2451_v9 = vld [vmem:[%s5037_s3 + $0x8e8] sm:$0xff]  ;;  %v930_v40 = vmax.f32 %v3827_v59, %v3891_v29  ;;  %v2450_v46 = vld [vmem:[%s5037_s3 + $0x8e0] sm:$0xff]  ;;  %v1094_v59 = vld [vmem:[%s5037_s3 + $0x78] sm:$0xff] }
 0x16b   :  { %1301 = vmatprep.subr.mxu1 %v1106_v53  ;;  %v818_v13 = vpop.f32.mrf.mxu0  ;;  %v1095_v53 = vld [vmem:[%s5037_s3 + $0x80] sm:$0xff]  ;;  %v2449_v29 = vld [vmem:[%s5037_s3 + $0x8d8] sm:$0xff] }
 0x16c   :  { %v1024_v57 = vmax.f32 %v1008_v22, %v972_v47  ;;  %1302 = vmatpush1.msra.mxu1 %v1105_v51  ;;  %v1051_v23 = vadd.f32 %v3953_v26, %v1023_v54  ;;  %v973_v35 = vmax.f32 %v925_v60, %v818_v13  ;;  %v4069_v51 = vpop.f32.mrf.mxu1  ;;  %v1093_v13 = vld [vmem:[%s5037_s3 + $0x70] sm:$0xff]  ;;  %v1091_v60 = vld [vmem:[%s5037_s3 + $0x60] sm:$0xff] }
 0x16d   :  { %1303 = vmatprep.subr.mxu1 %v1104_v41  ;;  %v820_v2 = vpop.f32.mrf.mxu0 }
 0x16e   :  { %1304 = vmatpush1.msra.mxu1 %v1103_v12  ;;  %v1052_v48 = vadd.f32 %v3957_v50, %v1024_v57  ;;  %v974_v7 = vmax.f32 %v926_v31, %v820_v2  ;;  %v4044_v8 = vmax.f32 %v1051_v23, 0.0  ;;  %v2448_v12 = vld [vmem:[%s5037_s3 + $0x8d0] sm:$0xff]  ;;  %v2447_v2 = vld [vmem:[%s5037_s3 + $0x8c8] sm:$0xff]  ;;  %v1090_v23 = vld [vmem:[%s5037_s3 + $0x58] sm:$0xff] }
 0x16f   :  { %1305 = vmatprep.subr.mxu1 %v1102_v56  ;;  %v824_v25 = vpop.f32.mrf.mxu0  ;;  %v1092_v56 = vld [vmem:[%s5037_s3 + $0x68] sm:$0xff]  ;;  %v2445_v31 = vld [vmem:[%s5037_s3 + $0x8b8] sm:$0xff] }
 0x170   :  { %v975_v0 = vmax.f32 %v927_v21, %v824_v25  ;;  %1306 = vmatpush1.msra.mxu1 %v1101_v62  ;;  %v4034_v4 = vmax.f32 %v1052_v48, 0.0  ;;  %v2446_v21 = vld [vmem:[%s5037_s3 + $0x8c0] sm:$0xff]  ;;  %v931_v25 = vmax.f32 %v3829_v49, %v3897_v32  ;;  %v5075_v49 = vld [vmem:[#allocation4_spill] sm:$0xff] }
 0x171   :  { %1307 = vmatprep.subr.mxu1 %v1100_v33  ;;  %v826_v52 = vpop.f32.mrf.mxu0  ;;  %v4095_v33 = vpop.f32.mrf.mxu1  ;;  %v934_v32 = vmax.f32 %v5075_v49, %v3920_v19  ;;  %v1087_v19 = vld [vmem:[%s5037_s3 + $0x40] sm:$0xff]  ;;  %v1080_v49 = vld [vmem:[%s5037_s3 + $0x8] sm:$0xff] }
 0x172   :  { %v1009_v1 = vmax.f32 %v973_v35, %v975_v0  ;;  %v976_v10 = vmax.f32 %v928_v44, %v826_v52  ;;  %1308 = vmatpush1.msra.mxu1 %v1099_v55  ;;  %1278 = vmatprep.mubr.f32.mxu1 %v4034_v4  ;;  %v5072_v55 = vld [vmem:[#allocation3_spill] sm:$0xff]  ;;  %v1089_v0 = vld [vmem:[%s5037_s3 + $0x50] sm:$0xff]  ;;  %v5074_v52 = vld [vmem:[#allocation2_spill] sm:$0xff] }
 0x173   :  { %1309 = vmatprep.subr.mxu1 %v1098_v37  ;;  %1515 = vmatprep.mubr.f32.mxu0 %v4034_v4  ;;  %v830_v24 = vpop.f32.mrf.mxu0  ;;  %v933_v44 = vmax.f32 %v5072_v55, %v3911_v11  ;;  %v2444_v37 = vld [vmem:[%s5037_s3 + $0x8b0] sm:$0xff]  ;;  %v2438_v55 = vld [vmem:[%s5037_s3 + $0x880] sm:$0xff] }
 0x174   :  { %v1010_v22 = vmax.f32 %v974_v7, %v976_v10  ;;  %v977_v43 = vmax.f32 %v929_v17, %v830_v24  ;;  %1279 = vmatmul.mubr.f32.gmra.mxu1 %v4044_v8  ;;  %1516 = vmatmul.mubr.f32.vlgmr.msra.gmra.mxu0 %v4044_v8  ;;  %v5073_v17 = vld [vmem:[#allocation25_spill] sm:$0xff]  ;;  %v2443_v10 = vld [vmem:[%s5037_s3 + $0x8a8] sm:$0xff] }
 0x175   :  { %1310 = vmatpush1.msra.mxu1 %v1097_v45  ;;  %1776 = vmatpush1.msra.mxu0 %v2452_v58  ;;  %v832_v54 = vpop.f32.mrf.mxu0  ;;  %v932_v7 = vmax.f32 %v5074_v52, %v5073_v17  ;;  %v1081_v17 = vld [vmem:[%s5037_s3 + $0x10] sm:$0xff] }
 0x176   :  { %v1025_v47 = vmax.f32 %v1009_v1, %v977_v43  ;;  %1311 = vmatprep.subr.mxu1 %v1096_v15  ;;  %1777 = vmatprep.subr.mxu0 %v2451_v9  ;;  %v978_v41 = vmax.f32 %v930_v40, %v832_v54  ;;  %v1088_v1 = vld [vmem:[%s5037_s3 + $0x48] sm:$0xff]  ;;  %v2442_v9 = vld [vmem:[%s5037_s3 + $0x8a0] sm:$0xff]  ;;  %v5076_v40 = vld [vmem:[#allocation5_spill] sm:$0xff]  ;;  %v4135_v43 = vpop.f32.mrf.mxu1 }
 0x177   :  { %1312 = vmatpush1.msra.mxu1 %v1095_v53  ;;  %1778 = vmatpush1.msra.mxu0 %v2450_v46  ;;  %v836_v57 = vpop.f32.mrf.mxu0  ;;  %v1086_v46 = vld [vmem:[%s5037_s3 + $0x38] sm:$0xff]  ;;  %v2436_v52 = vld [vmem:[%s5037_s3 + $0x870] sm:$0xff] }
 0x178   :  { %v1026_v62 = vmax.f32 %v1010_v22, %v978_v41  ;;  %1313 = vmatprep.subr.mxu1 %v1094_v59  ;;  %1779 = vmatprep.subr.mxu0 %v2449_v29  ;;  %v1053_v45 = vadd.f32 %v3953_v26, %v1025_v47  ;;  %v979_v24 = vmax.f32 %v931_v25, %v836_v57  ;;  %v2441_v47 = vld [vmem:[%s5037_s3 + $0x898] sm:$0xff]  ;;  %v5077_v41 = vld [vmem:[#allocation6_spill] sm:$0xff] }
 0x179   :  { %1314 = vmatpush1.msra.mxu1 %v1093_v13  ;;  %1780 = vmatpush1.msra.mxu0 %v2448_v12  ;;  %v838_v48 = vpop.f32.mrf.mxu0  ;;  %v935_v22 = vmax.f32 %v5076_v40, %v3926_v3  ;;  %v936_v13 = vmax.f32 %v5077_v41, %v3938_v38  ;;  %v1084_v38 = vld [vmem:[%s5037_s3 + $0x28] sm:$0xff]  ;;  %v1083_v25 = vld [vmem:[%s5037_s3 + $0x20] sm:$0xff]  ;;  %v5080_v40 = vld [vmem:[#allocation8_spill] sm:$0xff] }
 0x17a   :  { %v1054_v35 = vadd.f32 %v3957_v50, %v1026_v62  ;;  %1315 = vmatprep.subr.mxu1 %v1092_v56  ;;  %1781 = vmatprep.subr.mxu0 %v2447_v2  ;;  %v980_v54 = vmax.f32 %v932_v7, %v838_v48  ;;  %v4145_v12 = vmax.f32 %v1053_v45, 0.0  ;;  %v1085_v2 = vld [vmem:[%s5037_s3 + $0x30] sm:$0xff]  ;;  %v5079_v45 = vld [vmem:[#allocation9_spill] sm:$0xff] }
 0x17b   :  { %1316 = vmatpush1.msra.mxu1 %v1091_v60  ;;  %1782 = vmatpush1.msra.mxu0 %v2446_v21  ;;  %v842_v11 = vpop.f32.mrf.mxu0  ;;  %v2440_v62 = vld [vmem:[%s5037_s3 + $0x890] sm:$0xff]  ;;  %v4154_v60 = vpop.f32.mrf.mxu1  ;;  %v2439_v21 = vld [vmem:[%s5037_s3 + $0x888] sm:$0xff] }
 0x17c   :  { %v4125_v58 = vmax.f32 %v1054_v35, 0.0  ;;  %1317 = vmatprep.subr.mxu1 %v1090_v23  ;;  %1783 = vmatprep.subr.mxu0 %v2445_v31  ;;  %v981_v15 = vmax.f32 %v933_v44, %v842_v11  ;;  %v1082_v44 = vld [vmem:[%s5037_s3 + $0x18] sm:$0xff] }
 0x17d   :  { %1318 = vmatpush1.msra.mxu1 %v1089_v0  ;;  %1784 = vmatpush1.msra.mxu0 %v2444_v37  ;;  %v844_v53 = vpop.f32.mrf.mxu0  ;;  %v2437_v35 = vld [vmem:[%s5037_s3 + $0x878] sm:$0xff]  ;;  %v4183_v7 = vpop.f32.mrf.mxu1 }
 0x17e   :  { %v1011_v59 = vmax.f32 %v979_v24, %v981_v15  ;;  %1319 = vmatprep.subr.mxu1 %v1088_v1  ;;  %1785 = vmatprep.subr.mxu0 %v2443_v10  ;;  %v982_v29 = vmax.f32 %v934_v32, %v844_v53  ;;  %v2435_v32 = vld [vmem:[%s5037_s3 + $0x868] sm:$0xff]  ;;  %v939_v24 = vmax.f32 %v5079_v45, %v3976_v61  ;;  %v2433_v61 = vld [vmem:[%s5037_s3 + $0x858] sm:$0xff] }
 0x17f   :  { %1320 = vmatpush1.msra.mxu1 %v1087_v19  ;;  %1786 = vmatpush1.msra.mxu0 %v2442_v9  ;;  %v848_v3 = vpop.f32.mrf.mxu0  ;;  %v5078_v1 = vld [vmem:[#allocation7_spill] sm:$0xff]  ;;  %v1079_v19 = vld [vmem:[%s5037_s3] sm:$0xff] }
 0x180   :  { %v1012_v57 = vmax.f32 %v980_v54, %v982_v29  ;;  %1284 = vmatprep.mubr.f32.mxu1 %v4125_v58  ;;  %1321 = vmatprep.subr.mxu1 %v1086_v46  ;;  %v983_v56 = vmax.f32 %v935_v22, %v848_v3  ;;  %v937_v10 = vmax.f32 %v5078_v1, %v3949_v34  ;;  %v2434_v9 = vld [vmem:[%s5037_s3 + $0x860] sm:$0xff]  ;;  %v1142_v34 = vld [vmem:[%s5037_s3 + $0x1f8] sm:$0xff]  ;;  %v5082_v3 = vld [vmem:[#allocation11_spill] sm:$0xff] }
 0x181   :  { %1521 = vmatprep.mubr.f32.mxu0 %v4125_v58  ;;  %1787 = vmatprep.subr.mxu0 %v2441_v47  ;;  %v850_v48 = vpop.f32.mrf.mxu0  ;;  %v938_v22 = vmax.f32 %v5080_v40, %v3959_v20  ;;  %v5081_v46 = vld [vmem:[#allocation10_spill] sm:$0xff]  ;;  %v1141_v20 = vld [vmem:[%s5037_s3 + $0x1f0] sm:$0xff]  ;;  %v941_v41 = vmax.f32 %v5082_v3, %v4013_v6 }
 0x182   :  { %v1027_v23 = vmax.f32 %v1011_v59, %v983_v56  ;;  %1285 = vmatmul.mubr.f32.gmra.mxu1 %v4145_v12  ;;  %1522 = vmatmul.mubr.f32.gmra.mxu0 %v4145_v12  ;;  %v984_v31 = vmax.f32 %v936_v13, %v850_v48  ;;  %v940_v54 = vmax.f32 %v5081_v46, %v3999_v28  ;;  %v2432_v47 = vld [vmem:[%s5037_s3 + $0x850] sm:$0xff]  ;;  %v4220_v13 = vpop.f32.mrf.mxu1  ;;  %v1140_v28 = vld [vmem:[%s5037_s3 + $0x1e8] sm:$0xff]  ;;  %v1139_v48 = vld [vmem:[%s5037_s3 + $0x1e0] sm:$0xff] }
 0x183   :  { %1322 = vmatpush1.msra.mxu1 %v1085_v2  ;;  %1788 = vmatpush1.msra.mxu0 %v2440_v62  ;;  %v854_v0 = vpop.f32.mrf.mxu0  ;;  %v2431_v56 = vld [vmem:[%s5037_s3 + $0x848] sm:$0xff] }
 0x184   :  { %1323 = vmatprep.subr.mxu1 %v1084_v38  ;;  %1789 = vmatprep.subr.mxu0 %v2439_v21  ;;  %v1028_v37 = vmax.f32 %v1012_v57, %v984_v31  ;;  %v985_v59 = vmax.f32 %v937_v10, %v854_v0  ;;  %v1055_v57 = vadd.f32 %v3953_v26, %v1027_v23  ;;  %v2430_v23 = vld [vmem:[%s5037_s3 + $0x840] sm:$0xff]  ;;  %v5083_v31 = vld [vmem:[#allocation12_spill] sm:$0xff]  ;;  %v2429_v0 = vld [vmem:[%s5037_s3 + $0x838] sm:$0xff] }
 0x185   :  { %1324 = vmatpush1.msra.mxu1 %v1083_v25  ;;  %1790 = vmatpush1.msra.mxu0 %v2438_v55  ;;  %v856_v11 = vpop.f32.mrf.mxu0  ;;  %v942_v25 = vmax.f32 %v5083_v31, %v4041_v39  ;;  %v1138_v55 = vld [vmem:[%s5037_s3 + $0x1d8] sm:$0xff]  ;;  %v1136_v10 = vld [vmem:[%s5037_s3 + $0x1c8] sm:$0xff] }
 0x186   :  { %v1056_v15 = vadd.f32 %v3957_v50, %v1028_v37  ;;  %1325 = vmatprep.subr.mxu1 %v1082_v44  ;;  %1791 = vmatprep.subr.mxu0 %v2437_v35  ;;  %v986_v38 = vmax.f32 %v938_v22, %v856_v11  ;;  %v1137_v11 = vld [vmem:[%s5037_s3 + $0x1d0] sm:$0xff]  ;;  %v2426_v22 = vld [vmem:[%s5037_s3 + $0x820] sm:$0xff] }
 0x187   :  { %1326 = vmatpush1.msra.mxu1 %v1081_v17  ;;  %1792 = vmatpush1.msra.mxu0 %v2436_v52  ;;  %v860_v53 = vpop.f32.mrf.mxu0  ;;  %v1048_v17 = vadd.f32 %v3957_v50, %v3924_v14  ;;  %v4247_v52 = vpop.f32.mrf.mxu1  ;;  %v2428_v14 = vld [vmem:[%s5037_s3 + $0x830] sm:$0xff] }
 0x188   :  { %1327 = vmatprep.subr.mxu1 %v1080_v49  ;;  %1793 = vmatprep.subr.mxu0 %v2435_v32  ;;  %v987_v29 = vmax.f32 %v939_v24, %v860_v53  ;;  %v4229_v62 = vmax.f32 %v1056_v15, 0.0  ;;  %v4249_v49 = vmax.f32 %v1055_v57, 0.0  ;;  %v2427_v15 = vld [vmem:[%s5037_s3 + $0x828] sm:$0xff]  ;;  %v5084_v53 = vld [vmem:[#allocation13_spill] sm:$0xff]  ;;  %v5087_v57 = vld [vmem:[#allocation16_spill] sm:$0xff] }
 0x189   :  { %1328 = vmatpush1.msra.mxu1 %v1079_v19  ;;  %1794 = vmatpush1.msra.mxu0 %v2434_v9  ;;  %v862_v2 = vpop.f32.mrf.mxu0  ;;  %v1064_v24 = vmax.f32 %v1048_v17, 0.0  ;;  %v1135_v9 = vld [vmem:[%s5037_s3 + $0x1c0] sm:$0xff]  ;;  %v4272_v40 = vpop.f32.mrf.mxu1  ;;  %v943_v46 = vmax.f32 %v5084_v53, %v4069_v51  ;;  %v2424_v51 = vld [vmem:[%s5037_s3 + $0x810] sm:$0xff] }
 0x18a   :  { %1329 = vmatprep.subr.mxu1 %v1142_v34  ;;  %1795 = vmatprep.subr.mxu0 %v2433_v61  ;;  %v1013_v6 = vmax.f32 %v985_v59, %v987_v29  ;;  %v988_v21 = vmax.f32 %v940_v54, %v862_v2  ;;  %v1134_v34 = vld [vmem:[%s5037_s3 + $0x1b8] sm:$0xff]  ;;  %v5085_v54 = vld [vmem:[#allocation15_spill] sm:$0xff]  ;;  %v1131_v2 = vld [vmem:[%s5037_s3 + $0x1a0] sm:$0xff] }
 0x18b   :  { %1330 = vmatpush2.msra.mxu1 %v1141_v20  ;;  %1796 = vmatpush1.msra.mxu0 %v2432_v47  ;;  %v866_v44 = vpop.f32.mrf.mxu0  ;;  %v945_v59 = vmax.f32 %v5085_v54, %v4135_v43  ;;  %v2425_v29 = vld [vmem:[%s5037_s3 + $0x818] sm:$0xff]  ;;  %v1133_v20 = vld [vmem:[%s5037_s3 + $0x1b0] sm:$0xff]  ;;  %v5086_v47 = vld [vmem:[#allocation14_spill] sm:$0xff] }
 0x18c   :  { %1331 = vmatprep.subr.mxu1 %v1140_v28  ;;  %1797 = vmatprep.subr.mxu0 %v2431_v56  ;;  %v1014_v35 = vmax.f32 %v986_v38, %v988_v21  ;;  %v989_v37 = vmax.f32 %v941_v41, %v866_v44  ;;  %v944_v3 = vmax.f32 %v5086_v47, %v4095_v33  ;;  %v1132_v43 = vld [vmem:[%s5037_s3 + $0x1a8] sm:$0xff] }
 0x18d   :  { %1332 = vmatpush2.msra.mxu1 %v1139_v48  ;;  %1798 = vmatpush1.msra.mxu0 %v2430_v23  ;;  %v868_v39 = vpop.f32.mrf.mxu0  ;;  %v946_v28 = vmax.f32 %v5087_v57, %v4154_v60  ;;  %v2423_v33 = vld [vmem:[%s5037_s3 + $0x808] sm:$0xff]  ;;  %v4308_v48 = vpop.f32.mrf.mxu1  ;;  %v2422_v60 = vld [vmem:[%s5037_s3 + $0x800] sm:$0xff]  ;;  %v1130_v23 = vld [vmem:[%s5037_s3 + $0x198] sm:$0xff] }
 0x18e   :  { %1290 = vmatprep.mubr.f32.mxu1 %v4229_v62  ;;  %1333 = vmatprep.subr.mxu1 %v1138_v55  ;;  %v4252_v32 = vmax.f32 %v1013_v6, %v989_v37  ;;  %v990_v1 = vmax.f32 %v942_v25, %v868_v39  ;;  %v5088_v6 = vld [vmem:[#allocation17_spill] sm:$0xff]  ;;  %v5089_v37 = vld [vmem:[#allocation18_spill] sm:$0xff]  ;;  %v2484_v39 = vld [vmem:[%s5037_s3 + $0x9f0] sm:$0xff] }
 0x18f   :  { %1527 = vmatprep.mubr.f32.mxu0 %v4229_v62  ;;  %1799 = vmatprep.subr.mxu0 %v2429_v0  ;;  %v872_v45 = vpop.f32.mrf.mxu0  ;;  %v947_v21 = vmax.f32 %v5088_v6, %v4183_v7  ;;  %v2485_v7 = vld [vmem:[%s5037_s3 + $0x9f8] sm:$0xff]  ;;  %v948_v17 = vmax.f32 %v5089_v37, %v4220_v13  ;;  %v1127_v13 = vld [vmem:[%s5037_s3 + $0x180] sm:$0xff]  ;;  %v2475_v37 = vld [vmem:[%s5037_s3 + $0x9a8] sm:$0xff] }
 0x190   :  { %1291 = vmatmul.mubr.f32.gmra.mxu1 %v4249_v49  ;;  %1528 = vmatmul.mubr.f32.gmra.mxu0 %v4249_v49  ;;  %v1030_v19 = vmax.f32 %v1014_v35, %v990_v1  ;;  %v991_v56 = vmax.f32 %v943_v46, %v872_v45  ;;  %v1129_v35 = vld [vmem:[%s5037_s3 + $0x190] sm:$0xff]  ;;  %v2483_v1 = vld [vmem:[%s5037_s3 + $0x9e8] sm:$0xff] }
 0x191   :  { %1334 = vmatpush2.msra.mxu1 %v1137_v11  ;;  %1800 = vmatpush1.msra.mxu0 %v2428_v14  ;;  %v874_v61 = vpop.f32.mrf.mxu0  ;;  %v1128_v11 = vld [vmem:[%s5037_s3 + $0x188] sm:$0xff]  ;;  %v1125_v46 = vld [vmem:[%s5037_s3 + $0x170] sm:$0xff] }
 0x192   :  { %1335 = vmatprep.subr.mxu1 %v1136_v10  ;;  %1361 = vmatprep.mubr.f32.mxu1 %v1064_v24  ;;  %v1058_v25 = vadd.f32 %v3957_v50, %v1030_v19  ;;  %v992_v55 = vmax.f32 %v944_v3, %v874_v61  ;;  %v1057_v24 = vadd.f32 %v3953_v26, %v4252_v32  ;;  %v2482_v19 = vld [vmem:[%s5037_s3 + $0x9e0] sm:$0xff]  ;;  %v2481_v32 = vld [vmem:[%s5037_s3 + $0x9d8] sm:$0xff] }
 0x193   :  { %1801 = vmatprep.subr.mxu0 %v2427_v15  ;;  %1336 = vmatpush2.msra.mxu1 %v1135_v9  ;;  %v878_v41 = vpop.f32.mrf.mxu0  ;;  %v689_v15 = vpop.f32.mrf.mxu1  ;;  %v1126_v9 = vld [vmem:[%s5037_s3 + $0x178] sm:$0xff] }
 0x194   :  { %1802 = vmatpush1.msra.mxu0 %v2426_v22  ;;  %1337 = vmatprep.subr.mxu1 %v1134_v34  ;;  %v993_v38 = vmax.f32 %v945_v59, %v878_v41  ;;  %v4345_v22 = vmax.f32 %v1058_v25, 0.0  ;;  %v4355_v59 = vmax.f32 %v1057_v24, 0.0  ;;  %v5090_v41 = vld [vmem:[#allocation19_spill] sm:$0xff]  ;;  %v2476_v25 = vld [vmem:[%s5037_s3 + $0x9b0] sm:$0xff] }
 0x195   :  { %1803 = vmatprep.subr.mxu0 %v2425_v29  ;;  %1338 = vmatpush2.msra.mxu1 %v1133_v20  ;;  %v880_v31 = vpop.f32.mrf.mxu0  ;;  %v2480_v29 = vld [vmem:[%s5037_s3 + $0x9d0] sm:$0xff]  ;;  %v1124_v20 = vld [vmem:[%s5037_s3 + $0x168] sm:$0xff]  ;;  %v693_v3 = vpop.f32.mrf.mxu1  ;;  %v949_v57 = vmax.f32 %v5090_v41, %v4247_v52  ;;  %v1122_v52 = vld [vmem:[%s5037_s3 + $0x158] sm:$0xff] }
 0x196   :  { %1804 = vmatpush1.msra.mxu0 %v2424_v51  ;;  %1339 = vmatprep.subr.mxu1 %v1132_v43  ;;  %v1015_v44 = vmax.f32 %v991_v56, %v993_v38  ;;  %v994_v0 = vmax.f32 %v946_v28, %v880_v31  ;;  %v2479_v51 = vld [vmem:[%s5037_s3 + $0x9c8] sm:$0xff]  ;;  %v5091_v28 = vld [vmem:[#allocation21_spill] sm:$0xff]  ;;  %v5092_v38 = vld [vmem:[#allocation20_spill] sm:$0xff] }
 0x197   :  { %1805 = vmatprep.subr.mxu0 %v2423_v33  ;;  %1340 = vmatpush2.msra.mxu1 %v1131_v2  ;;  %v884_v14 = vpop.f32.mrf.mxu0  ;;  %v951_v56 = vmax.f32 %v5091_v28, %v4308_v48  ;;  %v1123_v33 = vld [vmem:[%s5037_s3 + $0x160] sm:$0xff]  ;;  %v950_v6 = vmax.f32 %v5092_v38, %v4272_v40  ;;  %v1121_v40 = vld [vmem:[%s5037_s3 + $0x150] sm:$0xff]  ;;  %v1114_v41 = vld [vmem:[%s5037_s3 + $0x118] sm:$0xff]  ;;  %v1047_v28 = vadd.f32 %v3953_v26, %v3922_v18 }
 0x198   :  { %1806 = vmatpush1.msra.mxu0 %v2422_v60  ;;  %1341 = vmatprep.subr.mxu1 %v1130_v23  ;;  %v1016_v10 = vmax.f32 %v992_v55, %v994_v0  ;;  %v995_v45 = vmax.f32 %v947_v21, %v884_v14  ;;  %v2478_v2 = vld [vmem:[%s5037_s3 + $0x9c0] sm:$0xff]  ;;  %v2477_v21 = vld [vmem:[%s5037_s3 + $0x9b8] sm:$0xff]  ;;  %v1120_v0 = vld [vmem:[%s5037_s3 + $0x148] sm:$0xff] }
 0x199   :  { %1807 = vmatprep.subr.mxu0 %v2485_v7  ;;  %1342 = vmatpush2.msra.mxu1 %v1129_v35  ;;  %v886_v34 = vpop.f32.mrf.mxu0  ;;  %v5093_v60 = vld [vmem:[#allocation22_spill] sm:$0xff]  ;;  %v5094_v7 = vld [vmem:[#allocation23_spill] sm:$0xff]  ;;  %v695_v35 = vpop.f32.mrf.mxu1 }
 0x19a   :  { %1808 = vmatpush2.msra.mxu0 %v2484_v39  ;;  %1343 = vmatprep.subr.mxu1 %v1128_v11  ;;  %v4350_v61 = vmax.f32 %v1015_v44, %v995_v45  ;;  %v996_v53 = vmax.f32 %v948_v17, %v886_v34  ;;  %v952_v23 = vmax.f32 %v5093_v60, %v689_v15  ;;  %v1119_v11 = vld [vmem:[%s5037_s3 + $0x140] sm:$0xff]  ;;  %v2473_v45 = vld [vmem:[%s5037_s3 + $0x998] sm:$0xff]  ;;  %v5095_v15 = vld [vmem:[#allocation24_spill] sm:$0xff] }
 0x19b   :  { %1809 = vmatprep.subr.mxu0 %v2483_v1  ;;  %1344 = vmatpush2.msra.mxu1 %v1127_v13  ;;  %v890_v54 = vpop.f32.mrf.mxu0  ;;  %v953_v44 = vmax.f32 %v5094_v7, %v693_v3  ;;  %v2474_v14 = vld [vmem:[%s5037_s3 + $0x9a0] sm:$0xff]  ;;  %v1118_v13 = vld [vmem:[%s5037_s3 + $0x138] sm:$0xff]  ;;  %v2472_v34 = vld [vmem:[%s5037_s3 + $0x990] sm:$0xff] }
 0x19c   :  { %1810 = vmatpush2.msra.mxu0 %v2482_v19  ;;  %1345 = vmatprep.subr.mxu1 %v1126_v9  ;;  %v4363_v47 = vmax.f32 %v1016_v10, %v996_v53  ;;  %v997_v31 = vmax.f32 %v949_v57, %v890_v54  ;;  %v954_v19 = vmax.f32 %v5095_v15, %v695_v35  ;;  %v1117_v9 = vld [vmem:[%s5037_s3 + $0x130] sm:$0xff]  ;;  %v2471_v54 = vld [vmem:[%s5037_s3 + $0x988] sm:$0xff]  ;;  %v2470_v3 = vld [vmem:[%s5037_s3 + $0x980] sm:$0xff] }
 0x19d   :  { %1533 = vmatprep.mubr.f32.mxu0 %v4345_v22  ;;  %1811 = vmatprep.subr.mxu0 %v2481_v32  ;;  %v892_v43 = vpop.f32.mrf.mxu0  ;;  %v2469_v57 = vld [vmem:[%s5037_s3 + $0x978] sm:$0xff]  ;;  %v1112_v38 = vld [vmem:[%s5037_s3 + $0x108] sm:$0xff]  ;;  %v2462_v7 = vld [vmem:[%s5037_s3 + $0x940] sm:$0xff] }
 0x19e   :  { %1346 = vmatpush2.msra.mxu1 %v1125_v46  ;;  %1534 = vmatmul.mubr.f32.gmra.mxu0 %v4355_v59  ;;  %v998_v39 = vmax.f32 %v950_v6, %v892_v43  ;;  %v1116_v46 = vld [vmem:[%s5037_s3 + $0x128] sm:$0xff]  ;;  %v1111_v6 = vld [vmem:[%s5037_s3 + $0x100] sm:$0xff]  ;;  %v2465_v60 = vld [vmem:[%s5037_s3 + $0x958] sm:$0xff]  ;;  %v4555_v15 = vadd.f32 %v3957_v50, %v4363_v47 }
 0x19f   :  { %1812 = vmatpush2.msra.mxu0 %v2480_v29  ;;  %1347 = vmatprep.subr.mxu1 %v1124_v20  ;;  %v896_v48 = vpop.f32.mrf.mxu0  ;;  %v1115_v20 = vld [vmem:[%s5037_s3 + $0x120] sm:$0xff]  ;;  %v2467_v18 = vld [vmem:[%s5037_s3 + $0x968] sm:$0xff]  ;;  %v2460_v35 = vld [vmem:[%s5037_s3 + $0x930] sm:$0xff] }
 0x1a0   :  { %1813 = vmatprep.subr.mxu0 %v2479_v51  ;;  %1839 = vmatprep.mubr.f32.mxu0 %v4229_v62  ;;  %v999_v55 = vmax.f32 %v951_v56, %v896_v48  ;;  %v1113_v56 = vld [vmem:[%s5037_s3 + $0x110] sm:$0xff]  ;;  %v1063_v48 = vmax.f32 %v1047_v28, 0.0  ;;  %v2362_v28 = vld [vmem:[%s5037_s3 + $0x620] sm:$0xff] }
 0x1a1   :  { %1348 = vmatpush2.msra.mxu1 %v1123_v33  ;;  %1814 = vmatpush2.msra.mxu0 %v2478_v2  ;;  %v898_v17 = vpop.f32.mrf.mxu0  ;;  %v2468_v33 = vld [vmem:[%s5037_s3 + $0x970] sm:$0xff] }
 0x1a2   :  { %1349 = vmatprep.subr.mxu1 %v1122_v52  ;;  %1815 = vmatprep.subr.mxu0 %v2477_v21  ;;  %v1017_v1 = vmax.f32 %v997_v31, %v999_v55  ;;  %v1000_v10 = vmax.f32 %v952_v23, %v898_v17  ;;  %v2466_v52 = vld [vmem:[%s5037_s3 + $0x960] sm:$0xff]  ;;  %v2389_v21 = vld [vmem:[%s5037_s3 + $0x6f8] sm:$0xff]  ;;  %v2388_v23 = vld [vmem:[%s5037_s3 + $0x6f0] sm:$0xff] }
 0x1a3   :  { %1350 = vmatpush2.msra.mxu1 %v1121_v40  ;;  %1816 = vmatpush2.msra.mxu0 %v2476_v25  ;;  %v902_v24 = vpop.f32.mrf.mxu0  ;;  %v2464_v31 = vld [vmem:[%s5037_s3 + $0x950] sm:$0xff]  ;;  %v2387_v40 = vld [vmem:[%s5037_s3 + $0x6e8] sm:$0xff]  ;;  %v2386_v55 = vld [vmem:[%s5037_s3 + $0x6e0] sm:$0xff] }
 0x1a4   :  { %1351 = vmatprep.subr.mxu1 %v1120_v0  ;;  %1817 = vmatprep.subr.mxu0 %v2475_v37  ;;  %v1018_v32 = vmax.f32 %v998_v39, %v1000_v10  ;;  %v1001_v53 = vmax.f32 %v953_v44, %v902_v24  ;;  %v2463_v25 = vld [vmem:[%s5037_s3 + $0x948] sm:$0xff]  ;;  %v2385_v44 = vld [vmem:[%s5037_s3 + $0x6d8] sm:$0xff]  ;;  %v2382_v17 = vld [vmem:[%s5037_s3 + $0x6c0] sm:$0xff] }
 0x1a5   :  { %1352 = vmatpush2.msra.mxu1 %v1119_v11  ;;  %1818 = vmatpush2.msra.mxu0 %v2474_v14  ;;  %v904_v29 = vpop.f32.mrf.mxu0  ;;  %v2383_v0 = vld [vmem:[%s5037_s3 + $0x6c8] sm:$0xff]  ;;  %v2380_v39 = vld [vmem:[%s5037_s3 + $0x6b0] sm:$0xff]  ;;  %v2378_v10 = vld [vmem:[%s5037_s3 + $0x6a0] sm:$0xff] }
 0x1a6   :  { %1353 = vmatprep.subr.mxu1 %v1118_v13  ;;  %1819 = vmatprep.subr.mxu0 %v2473_v45  ;;  %v4434_v51 = vmax.f32 %v1017_v1, %v1001_v53  ;;  %v1002_v43 = vmax.f32 %v954_v19, %v904_v29  ;;  %v2459_v37 = vld [vmem:[%s5037_s3 + $0x928] sm:$0xff]  ;;  %v2456_v11 = vld [vmem:[%s5037_s3 + $0x910] sm:$0xff]  ;;  %v2377_v13 = vld [vmem:[%s5037_s3 + $0x698] sm:$0xff] }
 0x1a7   :  { %1354 = vmatpush2.msra.mxu1 %v1117_v9  ;;  %1820 = vmatpush2.msra.mxu0 %v2472_v34  ;;  %v2379_v14 = vld [vmem:[%s5037_s3 + $0x6a8] sm:$0xff]  ;;  %v2376_v45 = vld [vmem:[%s5037_s3 + $0x690] sm:$0xff]  ;;  %v2374_v19 = vld [vmem:[%s5037_s3 + $0x680] sm:$0xff]  ;;  %v4571_v34 = vadd.f32 %v3953_v26, %v4350_v61 }
 0x1a8   :  { %1355 = vmatprep.subr.mxu1 %v1116_v46  ;;  %1821 = vmatprep.subr.mxu0 %v2471_v54  ;;  %v4450_v2 = vmax.f32 %v1018_v32, %v1002_v43  ;;  %v2455_v1 = vld [vmem:[%s5037_s3 + $0x908] sm:$0xff]  ;;  %v2373_v9 = vld [vmem:[%s5037_s3 + $0x678] sm:$0xff]  ;;  %v2372_v47 = vld [vmem:[%s5037_s3 + $0x670] sm:$0xff]  ;;  %v1076_v32 = vmax.f32 %v4555_v15, 0.0  ;;  %v1061_v29 = vadd.f32 %v3953_v26, %v4434_v51 }
 0x1a9   :  { %1356 = vmatpush2.msra.mxu1 %v1115_v20  ;;  %1822 = vmatpush2.msra.mxu0 %v2470_v3  ;;  %v2375_v24 = vld [vmem:[%s5037_s3 + $0x688] sm:$0xff]  ;;  %v2370_v46 = vld [vmem:[%s5037_s3 + $0x660] sm:$0xff]  ;;  %v2369_v61 = vld [vmem:[%s5037_s3 + $0x658] sm:$0xff]  ;;  %v1075_v54 = vmax.f32 %v4571_v34, 0.0 }
 0x1aa   :  { %1357 = vmatprep.subr.mxu1 %v1114_v41  ;;  %1823 = vmatprep.subr.mxu0 %v2469_v57  ;;  %v1062_v53 = vadd.f32 %v3957_v50, %v4450_v2  ;;  %v2368_v50 = vld [vmem:[%s5037_s3 + $0x650] sm:$0xff]  ;;  %v2367_v3 = vld [vmem:[%s5037_s3 + $0x648] sm:$0xff]  ;;  %v2366_v43 = vld [vmem:[%s5037_s3 + $0x640] sm:$0xff]  ;;  %v1077_v51 = vmax.f32 %v1061_v29, 0.0 }
 0x1ab   :  { %1358 = vmatpush2.msra.mxu1 %v1113_v56  ;;  %1824 = vmatpush2.msra.mxu0 %v2468_v33  ;;  %v2365_v26 = vld [vmem:[%s5037_s3 + $0x638] sm:$0xff]  ;;  %v2364_v41 = vld [vmem:[%s5037_s3 + $0x630] sm:$0xff]  ;;  %v2363_v57 = vld [vmem:[%s5037_s3 + $0x628] sm:$0xff] }
 0x1ac   :  { %1359 = vmatprep.subr.mxu1 %v1112_v38  ;;  %1825 = vmatprep.subr.mxu0 %v2467_v18  ;;  %v1078_v20 = vmax.f32 %v1062_v53, 0.0  ;;  %v2361_v56 = vld [vmem:[%s5037_s3 + $0x618] sm:$0xff]  ;;  %v2360_v33 = vld [vmem:[%s5037_s3 + $0x610] sm:$0xff]  ;;  %v2359_v2 = vld [vmem:[%s5037_s3 + $0x608] sm:$0xff] }
 0x1ad   :  { %1360 = vmatpush2.msra.mxu1 %v1111_v6  ;;  %1826 = vmatpush2.msra.mxu0 %v2466_v52  ;;  %v2358_v38 = vld [vmem:[%s5037_s3 + $0x600] sm:$0xff]  ;;  %v2421_v18 = vld [vmem:[%s5037_s3 + $0x7f8] sm:$0xff]  ;;  %v2420_v6 = vld [vmem:[%s5037_s3 + $0x7f0] sm:$0xff] }
 0x1ae   :  { %1362 = vmatmul.mubr.f32.vlgmr.msra.gmra.mxu1 %v1063_v48  ;;  %1613 = vmatprep.subr.mxu1 %v2389_v21  ;;  %v2419_v52 = vld [vmem:[%s5037_s3 + $0x7e8] sm:$0xff]  ;;  %v2418_v21 = vld [vmem:[%s5037_s3 + $0x7e0] sm:$0xff]  ;;  %v2417_v48 = vld [vmem:[%s5037_s3 + $0x7d8] sm:$0xff] }
 0x1af   :  { %1827 = vmatprep.subr.mxu0 %v2465_v60  ;;  %1367 = vmatprep.mubr.f32.mxu1 %v1066_v63  ;;  %v2384_v63 = vld [vmem:[%s5037_s3 + $0x6d0] sm:$0xff]  ;;  %v1914_v15 = vld [vmem:[%s5039_s5 + $0xc8] sm:$0xff]  ;;  %v1912_v34 = vld [vmem:[%s5039_s5 + $0xb8] sm:$0xff] }
 0x1b0   :  { %1614 = vmatpush1.msra.mxu1 %v2388_v23  ;;  %1828 = vmatpush2.msra.mxu0 %v2464_v31  ;;  %v2416_v60 = vld [vmem:[%s5037_s3 + $0x7d0] sm:$0xff]  ;;  %v2415_v23 = vld [vmem:[%s5037_s3 + $0x7c8] sm:$0xff]  ;;  %v2414_v31 = vld [vmem:[%s5037_s3 + $0x7c0] sm:$0xff] }
 0x1b1   :  { %1615 = vmatprep.subr.mxu1 %v2387_v40  ;;  %1829 = vmatprep.subr.mxu0 %v2463_v25  ;;  %v2413_v40 = vld [vmem:[%s5037_s3 + $0x7b8] sm:$0xff]  ;;  %v2412_v25 = vld [vmem:[%s5037_s3 + $0x7b0] sm:$0xff]  ;;  %v1909_v53 = vld [vmem:[%s5039_s5 + $0xa0] sm:$0xff] }
 0x1b2   :  { %1616 = vmatpush1.msra.mxu1 %v2386_v55  ;;  %1830 = vmatpush2.msra.mxu0 %v2462_v7  ;;  %v2411_v55 = vld [vmem:[%s5037_s3 + $0x7a8] sm:$0xff]  ;;  %v2410_v7 = vld [vmem:[%s5037_s3 + $0x7a0] sm:$0xff]  ;;  %v1904_v29 = vld [vmem:[%s5039_s5 + $0x78] sm:$0xff] }
 0x1b3   :  { %1368 = vmatmul.mubr.f32.gmra.mxu1 %v1065_v36  ;;  %1617 = vmatprep.subr.mxu1 %v2385_v44  ;;  %v2381_v36 = vld [vmem:[%s5037_s3 + $0x6b8] sm:$0xff] }
 0x1b4   :  { %1831 = vmatprep.subr.mxu0 %v2461_v16  ;;  %1373 = vmatprep.mubr.f32.mxu1 %v4034_v4  ;;  %v2457_v4 = vld [vmem:[%s5037_s3 + $0x918] sm:$0xff]  ;;  %v2408_v16 = vld [vmem:[%s5037_s3 + $0x790] sm:$0xff] }
 0x1b5   :  { %1618 = vmatpush1.msra.mxu1 %v2384_v63  ;;  %1832 = vmatpush2.msra.mxu0 %v2460_v35  ;;  %v2409_v44 = vld [vmem:[%s5037_s3 + $0x798] sm:$0xff]  ;;  %v2407_v63 = vld [vmem:[%s5037_s3 + $0x788] sm:$0xff]  ;;  %v2406_v35 = vld [vmem:[%s5037_s3 + $0x780] sm:$0xff] }
 0x1b6   :  { %1619 = vmatprep.subr.mxu1 %v2383_v0  ;;  %1833 = vmatprep.subr.mxu0 %v2459_v37  ;;  %v2405_v0 = vld [vmem:[%s5037_s3 + $0x778] sm:$0xff]  ;;  %v2404_v37 = vld [vmem:[%s5037_s3 + $0x770] sm:$0xff] }
 0x1b7   :  { %1620 = vmatpush1.msra.mxu1 %v2382_v17  ;;  %1834 = vmatpush2.msra.mxu0 %v2458_v42  ;;  %v2403_v17 = vld [vmem:[%s5037_s3 + $0x768] sm:$0xff]  ;;  %v2402_v42 = vld [vmem:[%s5037_s3 + $0x760] sm:$0xff] }
 0x1b8   :  { %1374 = vmatmul.mubr.f32.gmra.mxu1 %v4044_v8  ;;  %1621 = vmatprep.subr.mxu1 %v2381_v36  ;;  %v2454_v8 = vld [vmem:[%s5037_s3 + $0x900] sm:$0xff]  ;;  %v2401_v36 = vld [vmem:[%s5037_s3 + $0x758] sm:$0xff] }
 0x1b9   :  { %1835 = vmatprep.subr.mxu0 %v2457_v4  ;;  %1379 = vmatprep.mubr.f32.mxu1 %v4125_v58  ;;  %v2400_v4 = vld [vmem:[%s5037_s3 + $0x750] sm:$0xff] }
 0x1ba   :  { %1622 = vmatpush1.msra.mxu1 %v2380_v39  ;;  %1836 = vmatpush2.msra.mxu0 %v2456_v11  ;;  %v2399_v39 = vld [vmem:[%s5037_s3 + $0x748] sm:$0xff]  ;;  %v2398_v11 = vld [vmem:[%s5037_s3 + $0x740] sm:$0xff] }
 0x1bb   :  { %1623 = vmatprep.subr.mxu1 %v2379_v14  ;;  %1837 = vmatprep.subr.mxu0 %v2455_v1  ;;  %v2397_v14 = vld [vmem:[%s5037_s3 + $0x738] sm:$0xff]  ;;  %v2396_v1 = vld [vmem:[%s5037_s3 + $0x730] sm:$0xff] }
 0x1bc   :  { %1624 = vmatpush1.msra.mxu1 %v2378_v10  ;;  %1838 = vmatpush2.msra.mxu0 %v2454_v8  ;;  %v2395_v10 = vld [vmem:[%s5037_s3 + $0x728] sm:$0xff]  ;;  %v2394_v8 = vld [vmem:[%s5037_s3 + $0x720] sm:$0xff] }
 0x1bd   :  { %1380 = vmatmul.mubr.f32.gmra.mxu1 %v4145_v12  ;;  %1625 = vmatprep.subr.mxu1 %v2377_v13  ;;  %v2393_v13 = vld [vmem:[%s5037_s3 + $0x718] sm:$0xff] }
 0x1be   :  { %1840 = vmatmul.mubr.f32.vlgmr.msra.gmra.mxu0 %v4249_v49  ;;  %1626 = vmatpush1.msra.mxu1 %v2376_v45  ;;  %v2392_v45 = vld [vmem:[%s5037_s3 + $0x710] sm:$0xff] }
 0x1bf   :  { %1677 = vmatprep.mubr.f32.mxu1 %v4125_v58  ;;  %1845 = vmatprep.mubr.f32.mxu0 %v4345_v22  ;;  %v2371_v58 = vld [vmem:[%s5037_s3 + $0x668] sm:$0xff] }
 0x1c0   :  { %1627 = vmatprep.subr.mxu1 %v2375_v24  ;;  %v2391_v24 = vld [vmem:[%s5037_s3 + $0x708] sm:$0xff] }
 0x1c1   :  { %1628 = vmatpush1.msra.mxu1 %v2374_v19  ;;  %v2390_v19 = vld [vmem:[%s5037_s3 + $0x700] sm:$0xff] }
 0x1c2   :  { %1629 = vmatprep.subr.mxu1 %v2373_v9  ;;  %1846 = vmatmul.mubr.f32.gmra.mxu0 %v4355_v59  ;;  %v1920_v9 = vld [vmem:[%s5039_s5 + $0xf8] sm:$0xff] }
 0x1c3   :  { %1630 = vmatpush1.msra.mxu1 %v2372_v47  ;;  %1851 = vmatprep.mubr.f32.mxu0 %v1076_v32  ;;  %v1913_v47 = vld [vmem:[%s5039_s5 + $0xc0] sm:$0xff] }
 0x1c4   :  { %1631 = vmatprep.subr.mxu1 %v2371_v58  ;;  %v1910_v58 = vld [vmem:[%s5039_s5 + $0xa8] sm:$0xff] }
 0x1c5   :  { %1632 = vmatpush1.msra.mxu1 %v2370_v46  ;;  %v1908_v46 = vld [vmem:[%s5039_s5 + $0x98] sm:$0xff] }
 0x1c6   :  { %1633 = vmatprep.subr.mxu1 %v2369_v61  ;;  %1852 = vmatmul.mubr.f32.gmra.mxu0 %v1075_v54  ;;  %v1907_v61 = vld [vmem:[%s5039_s5 + $0x90] sm:$0xff] }
 0x1c7   :  { %1634 = vmatpush1.msra.mxu1 %v2368_v50  ;;  %1857 = vmatprep.mubr.f32.mxu0 %v1078_v20  ;;  %v1905_v50 = vld [vmem:[%s5039_s5 + $0x80] sm:$0xff]  ;;  %v1903_v20 = vld [vmem:[%s5039_s5 + $0x70] sm:$0xff] }
 0x1c8   :  { %1635 = vmatprep.subr.mxu1 %v2367_v3  ;;  %v1902_v3 = vld [vmem:[%s5039_s5 + $0x68] sm:$0xff] }
 0x1c9   :  { %1636 = vmatpush1.msra.mxu1 %v2366_v43  ;;  %v1901_v43 = vld [vmem:[%s5039_s5 + $0x60] sm:$0xff] }
 0x1ca   :  { %1637 = vmatprep.subr.mxu1 %v2365_v26  ;;  %1858 = vmatmul.mubr.f32.gmra.mxu0 %v1077_v51  ;;  %v1900_v26 = vld [vmem:[%s5039_s5 + $0x58] sm:$0xff]  ;;  %v1899_v51 = vld [vmem:[%s5039_s5 + $0x50] sm:$0xff] }
 0x1cb   :  { %1638 = vmatpush1.msra.mxu1 %v2364_v41  ;;  %v1898_v41 = vld [vmem:[%s5039_s5 + $0x48] sm:$0xff] }
 0x1cc   :  { %1639 = vmatprep.subr.mxu1 %v2363_v57  ;;  %v1897_v57 = vld [vmem:[%s5039_s5 + $0x40] sm:$0xff] }
 0x1cd   :  { %1640 = vmatpush1.msra.mxu1 %v2362_v28  ;;  %v1896_v28 = vld [vmem:[%s5039_s5 + $0x38] sm:$0xff] }
 0x1ce   :  { %1641 = vmatprep.subr.mxu1 %v2361_v56  ;;  %v1895_v56 = vld [vmem:[%s5039_s5 + $0x30] sm:$0xff] }
 0x1cf   :  { %1642 = vmatpush1.msra.mxu1 %v2360_v33  ;;  %v1894_v33 = vld [vmem:[%s5039_s5 + $0x28] sm:$0xff] }
 0x1d0   :  { %1643 = vmatprep.subr.mxu1 %v2359_v2  ;;  %v1893_v2 = vld [vmem:[%s5039_s5 + $0x20] sm:$0xff] }
 0x1d1   :  { %1644 = vmatpush1.msra.mxu1 %v2358_v38  ;;  %v1892_v38 = vld [vmem:[%s5039_s5 + $0x18] sm:$0xff] }
 0x1d2   :  { %1645 = vmatprep.subr.mxu1 %v2421_v18  ;;  %v1891_v18 = vld [vmem:[%s5039_s5 + $0x10] sm:$0xff] }
 0x1d3   :  { %1646 = vmatpush2.msra.mxu1 %v2420_v6  ;;  %v1890_v6 = vld [vmem:[%s5039_s5 + $0x8] sm:$0xff] }
 0x1d4   :  { %1647 = vmatprep.subr.mxu1 %v2419_v52  ;;  %v1889_v52 = vld [vmem:[%s5039_s5] sm:$0xff] }
 0x1d5   :  { %1648 = vmatpush2.msra.mxu1 %v2418_v21  ;;  %v1952_v21 = vld [vmem:[%s5039_s5 + $0x1f8] sm:$0xff] }
 0x1d6   :  { %1649 = vmatprep.subr.mxu1 %v2417_v48  ;;  %v1951_v48 = vld [vmem:[%s5039_s5 + $0x1f0] sm:$0xff] }
 0x1d7   :  { %1650 = vmatpush2.msra.mxu1 %v2416_v60  ;;  %v1950_v60 = vld [vmem:[%s5039_s5 + $0x1e8] sm:$0xff] }
 0x1d8   :  { %1651 = vmatprep.subr.mxu1 %v2415_v23  ;;  %v1949_v23 = vld [vmem:[%s5039_s5 + $0x1e0] sm:$0xff] }
 0x1d9   :  { %1652 = vmatpush2.msra.mxu1 %v2414_v31  ;;  %v1948_v31 = vld [vmem:[%s5039_s5 + $0x1d8] sm:$0xff] }
 0x1da   :  { %1653 = vmatprep.subr.mxu1 %v2413_v40  ;;  %v1947_v40 = vld [vmem:[%s5039_s5 + $0x1d0] sm:$0xff] }
 0x1db   :  { %1654 = vmatpush2.msra.mxu1 %v2412_v25  ;;  %v1946_v25 = vld [vmem:[%s5039_s5 + $0x1c8] sm:$0xff] }
 0x1dc   :  { %1655 = vmatprep.subr.mxu1 %v2411_v55  ;;  %v1945_v55 = vld [vmem:[%s5039_s5 + $0x1c0] sm:$0xff] }
 0x1dd   :  { %1656 = vmatpush2.msra.mxu1 %v2410_v7  ;;  %v1944_v7 = vld [vmem:[%s5039_s5 + $0x1b8] sm:$0xff] }
 0x1de   :  { %1657 = vmatprep.subr.mxu1 %v2409_v44  ;;  %v1943_v44 = vld [vmem:[%s5039_s5 + $0x1b0] sm:$0xff] }
 0x1df   :  { %1658 = vmatpush2.msra.mxu1 %v2408_v16  ;;  %v1942_v16 = vld [vmem:[%s5039_s5 + $0x1a8] sm:$0xff] }
 0x1e0   :  { %1659 = vmatprep.subr.mxu1 %v2407_v63  ;;  %v1941_v63 = vld [vmem:[%s5039_s5 + $0x1a0] sm:$0xff] }
 0x1e1   :  { %1660 = vmatpush2.msra.mxu1 %v2406_v35  ;;  %v1940_v35 = vld [vmem:[%s5039_s5 + $0x198] sm:$0xff] }
 0x1e2   :  { %1661 = vmatprep.subr.mxu1 %v2405_v0  ;;  %v1939_v0 = vld [vmem:[%s5039_s5 + $0x190] sm:$0xff] }
 0x1e3   :  { %1662 = vmatpush2.msra.mxu1 %v2404_v37  ;;  %v1938_v37 = vld [vmem:[%s5039_s5 + $0x188] sm:$0xff] }
 0x1e4   :  { %1663 = vmatprep.subr.mxu1 %v2403_v17  ;;  %v1937_v17 = vld [vmem:[%s5039_s5 + $0x180] sm:$0xff] }
 0x1e5   :  { %1664 = vmatpush2.msra.mxu1 %v2402_v42  ;;  %v1936_v42 = vld [vmem:[%s5039_s5 + $0x178] sm:$0xff] }
 0x1e6   :  { %1665 = vmatprep.subr.mxu1 %v2401_v36  ;;  %v1935_v36 = vld [vmem:[%s5039_s5 + $0x170] sm:$0xff] }
 0x1e7   :  { %1666 = vmatpush2.msra.mxu1 %v2400_v4  ;;  %v1934_v4 = vld [vmem:[%s5039_s5 + $0x168] sm:$0xff] }
 0x1e8   :  { %1667 = vmatprep.subr.mxu1 %v2399_v39  ;;  %v1933_v39 = vld [vmem:[%s5039_s5 + $0x160] sm:$0xff] }
 0x1e9   :  { %1668 = vmatpush2.msra.mxu1 %v2398_v11  ;;  %v1932_v11 = vld [vmem:[%s5039_s5 + $0x158] sm:$0xff] }
 0x1ea   :  { %1669 = vmatprep.subr.mxu1 %v2397_v14  ;;  %v1931_v14 = vld [vmem:[%s5039_s5 + $0x150] sm:$0xff] }
 0x1eb   :  { %1670 = vmatpush2.msra.mxu1 %v2396_v1  ;;  %v1930_v1 = vld [vmem:[%s5039_s5 + $0x148] sm:$0xff] }
 0x1ec   :  { %1671 = vmatprep.subr.mxu1 %v2395_v10  ;;  %v1929_v10 = vld [vmem:[%s5039_s5 + $0x140] sm:$0xff] }
 0x1ed   :  { %1672 = vmatpush2.msra.mxu1 %v2394_v8  ;;  %v1928_v8 = vld [vmem:[%s5039_s5 + $0x138] sm:$0xff] }
 0x1ee   :  { %1673 = vmatprep.subr.mxu1 %v2393_v13  ;;  %v1927_v13 = vld [vmem:[%s5039_s5 + $0x130] sm:$0xff] }
 0x1ef   :  { %1674 = vmatpush2.msra.mxu1 %v2392_v45  ;;  %v1926_v45 = vld [vmem:[%s5039_s5 + $0x128] sm:$0xff] }
 0x1f0   :  { %1675 = vmatprep.subr.mxu1 %v2391_v24  ;;  %v1925_v24 = vld [vmem:[%s5039_s5 + $0x120] sm:$0xff] }
 0x1f1   :  { %1676 = vmatpush2.msra.mxu1 %v2390_v19  ;;  %v1924_v19 = vld [vmem:[%s5039_s5 + $0x118] sm:$0xff] }
 0x1f2   :  { %1678 = vmatmul.mubr.f32.vlgmr.msra.gmra.mxu1 %v4145_v12  ;;  %v1919_v12 = vld [vmem:[%s5039_s5 + $0xf0] sm:$0xff]  ;;  %1965 = vmatprep.subr.mxu1 %v1920_v9 }
 0x1f3   :  { %1683 = vmatprep.mubr.f32.mxu1 %v4229_v62  ;;  %v1918_v62 = vld [vmem:[%s5039_s5 + $0xe8] sm:$0xff]  ;;  %1966 = vmatpush1.msra.mxu1 %v1919_v12  ;;  %v1923_v9 = vld [vmem:[%s5039_s5 + $0x110] sm:$0xff] }
 0x1f4   :  { %1967 = vmatprep.subr.mxu1 %v1918_v62  ;;  %v1922_v12 = vld [vmem:[%s5039_s5 + $0x108] sm:$0xff]  ;;  %v1921_v62 = vld [vmem:[%s5039_s5 + $0x100] sm:$0xff] }
 0x1f6   :  { %1684 = vmatmul.mubr.f32.gmra.mxu1 %v4249_v49  ;;  %v1917_v49 = vld [vmem:[%s5039_s5 + $0xe0] sm:$0xff] }
 0x1f7   :  { %1689 = vmatprep.mubr.f32.mxu1 %v4345_v22  ;;  %v1916_v22 = vld [vmem:[%s5039_s5 + $0xd8] sm:$0xff]  ;;  %1968 = vmatpush1.msra.mxu1 %v1917_v49 }
 0x1f8   :  { %1969 = vmatprep.subr.mxu1 %v1916_v22  ;;  %v2069_v49 = vld [vmem:[%s5040_s7 + $0xf8] sm:$0xff] }
 0x1f9   :  { %v2053_v22 = vld [vmem:[%s5040_s7 + $0x78] sm:$0xff]  ;;  %2488 = vmatprep.subr.mxu0 %v2069_v49 }
 0x1fa   :  { %1690 = vmatmul.mubr.f32.gmra.mxu1 %v4355_v59  ;;  %v1915_v59 = vld [vmem:[%s5039_s5 + $0xd0] sm:$0xff]  ;;  %2489 = vmatpush3.msra.mxu0 %v2053_v22 }
 0x1fb   :  { %1695 = vmatprep.mubr.f32.mxu1 %v1076_v32  ;;  %1970 = vmatpush1.msra.mxu1 %v1915_v59  ;;  %v1911_v32 = vld [vmem:[%s5039_s5 + $0xb0] sm:$0xff] }
 0x1fc   :  { %1971 = vmatprep.subr.mxu1 %v1914_v15  ;;  %v2068_v59 = vld [vmem:[%s5040_s7 + $0xf0] sm:$0xff] }
 0x1fd   :  { %1972 = vmatpush1.msra.mxu1 %v1913_v47  ;;  %v2052_v15 = vld [vmem:[%s5040_s7 + $0x70] sm:$0xff]  ;;  %v2067_v47 = vld [vmem:[%s5040_s7 + $0xe8] sm:$0xff]  ;;  %2490 = vmatprep.subr.mxu0 %v2068_v59 }
 0x1fe   :  { %1696 = vmatmul.mubr.f32.gmra.mxu1 %v1075_v54  ;;  %1973 = vmatprep.subr.mxu1 %v1912_v34  ;;  %v1906_v54 = vld [vmem:[%s5039_s5 + $0x88] sm:$0xff] }
 0x1ff   :  { %1974 = vmatpush1.msra.mxu1 %v1911_v32  ;;  %v2051_v34 = vld [vmem:[%s5040_s7 + $0x68] sm:$0xff]  ;;  %2491 = vmatpush3.msra.mxu0 %v2052_v15  ;;  %v2066_v32 = vld [vmem:[%s5040_s7 + $0xe0] sm:$0xff] }
 0x200   :  { %1975 = vmatprep.subr.mxu1 %v1910_v58  ;;  %2492 = vmatprep.subr.mxu0 %v2067_v47  ;;  %v2050_v58 = vld [vmem:[%s5040_s7 + $0x60] sm:$0xff] }
 0x201   :  { %1976 = vmatpush1.msra.mxu1 %v1909_v53  ;;  %2493 = vmatpush3.msra.mxu0 %v2051_v34  ;;  %v2065_v53 = vld [vmem:[%s5040_s7 + $0xd8] sm:$0xff] }
 0x202   :  { %1977 = vmatprep.subr.mxu1 %v1908_v46  ;;  %2494 = vmatprep.subr.mxu0 %v2066_v32  ;;  %v2049_v46 = vld [vmem:[%s5040_s7 + $0x58] sm:$0xff] }
 0x203   :  { %1978 = vmatpush1.msra.mxu1 %v1907_v61  ;;  %2495 = vmatpush3.msra.mxu0 %v2050_v58  ;;  %v2064_v61 = vld [vmem:[%s5040_s7 + $0xd0] sm:$0xff] }
 0x204   :  { %1979 = vmatprep.subr.mxu1 %v1906_v54  ;;  %2496 = vmatprep.subr.mxu0 %v2065_v53  ;;  %v2048_v54 = vld [vmem:[%s5040_s7 + $0x50] sm:$0xff] }
 0x205   :  { %1980 = vmatpush1.msra.mxu1 %v1905_v50  ;;  %2497 = vmatpush3.msra.mxu0 %v2049_v46  ;;  %v2063_v50 = vld [vmem:[%s5040_s7 + $0xc8] sm:$0xff] }
 0x206   :  { %1981 = vmatprep.subr.mxu1 %v1904_v29  ;;  %2498 = vmatprep.subr.mxu0 %v2064_v61  ;;  %v2047_v29 = vld [vmem:[%s5040_s7 + $0x48] sm:$0xff] }
 0x207   :  { %1982 = vmatpush1.msra.mxu1 %v1903_v20  ;;  %2499 = vmatpush3.msra.mxu0 %v2048_v54  ;;  %v2062_v20 = vld [vmem:[%s5040_s7 + $0xc0] sm:$0xff] }
 0x208   :  { %1983 = vmatprep.subr.mxu1 %v1902_v3  ;;  %2500 = vmatprep.subr.mxu0 %v2063_v50  ;;  %v2046_v3 = vld [vmem:[%s5040_s7 + $0x40] sm:$0xff] }
 0x209   :  { %1984 = vmatpush1.msra.mxu1 %v1901_v43  ;;  %2501 = vmatpush3.msra.mxu0 %v2047_v29  ;;  %v2061_v43 = vld [vmem:[%s5040_s7 + $0xb8] sm:$0xff] }
 0x20a   :  { %1985 = vmatprep.subr.mxu1 %v1900_v26  ;;  %2502 = vmatprep.subr.mxu0 %v2062_v20  ;;  %v2045_v26 = vld [vmem:[%s5040_s7 + $0x38] sm:$0xff] }
 0x20b   :  { %1986 = vmatpush1.msra.mxu1 %v1899_v51  ;;  %2503 = vmatpush3.msra.mxu0 %v2046_v3  ;;  %v2060_v51 = vld [vmem:[%s5040_s7 + $0xb0] sm:$0xff] }
 0x20c   :  { %1987 = vmatprep.subr.mxu1 %v1898_v41  ;;  %2504 = vmatprep.subr.mxu0 %v2061_v43  ;;  %v2044_v41 = vld [vmem:[%s5040_s7 + $0x30] sm:$0xff] }
 0x20d   :  { %1988 = vmatpush1.msra.mxu1 %v1897_v57  ;;  %2505 = vmatpush3.msra.mxu0 %v2045_v26  ;;  %v2059_v57 = vld [vmem:[%s5040_s7 + $0xa8] sm:$0xff] }
 0x20e   :  { %1989 = vmatprep.subr.mxu1 %v1896_v28  ;;  %2506 = vmatprep.subr.mxu0 %v2060_v51  ;;  %v2043_v28 = vld [vmem:[%s5040_s7 + $0x28] sm:$0xff] }
 0x20f   :  { %1990 = vmatpush1.msra.mxu1 %v1895_v56  ;;  %2507 = vmatpush3.msra.mxu0 %v2044_v41  ;;  %v2058_v56 = vld [vmem:[%s5040_s7 + $0xa0] sm:$0xff] }
 0x210   :  { %1991 = vmatprep.subr.mxu1 %v1894_v33  ;;  %2508 = vmatprep.subr.mxu0 %v2059_v57  ;;  %v2042_v33 = vld [vmem:[%s5040_s7 + $0x20] sm:$0xff] }
 0x211   :  { %1992 = vmatpush1.msra.mxu1 %v1893_v2  ;;  %2509 = vmatpush3.msra.mxu0 %v2043_v28 }
 0x212   :  { %1993 = vmatprep.subr.mxu1 %v1892_v38  ;;  %2510 = vmatprep.subr.mxu0 %v2058_v56 }
 0x213   :  { %1994 = vmatpush1.msra.mxu1 %v1891_v18  ;;  %2511 = vmatpush3.msra.mxu0 %v2042_v33 }
 0x214   :  { %1995 = vmatprep.subr.mxu1 %v1890_v6 }
 0x215   :  { %1996 = vmatpush1.msra.mxu1 %v1889_v52 }
 0x216   :  { %1997 = vmatprep.subr.mxu1 %v1952_v21 }
 0x217   :  { %1998 = vmatpush2.msra.mxu1 %v1951_v48 }
 0x218   :  { %1999 = vmatprep.subr.mxu1 %v1950_v60 }
 0x219   :  { %2000 = vmatpush2.msra.mxu1 %v1949_v23 }
 0x21a   :  { %2001 = vmatprep.subr.mxu1 %v1948_v31 }
 0x21b   :  { %2002 = vmatpush2.msra.mxu1 %v1947_v40 }
 0x21c   :  { %2003 = vmatprep.subr.mxu1 %v1946_v25 }
 0x21d   :  { %2004 = vmatpush2.msra.mxu1 %v1945_v55 }
 0x21e   :  { %2005 = vmatprep.subr.mxu1 %v1944_v7 }
 0x21f   :  { %2006 = vmatpush2.msra.mxu1 %v1943_v44 }
 0x220   :  { %2007 = vmatprep.subr.mxu1 %v1942_v16 }
 0x221   :  { %2008 = vmatpush2.msra.mxu1 %v1941_v63 }
 0x222   :  { %2009 = vmatprep.subr.mxu1 %v1940_v35 }
 0x223   :  { %2010 = vmatpush2.msra.mxu1 %v1939_v0 }
 0x224   :  { %2011 = vmatprep.subr.mxu1 %v1938_v37 }
 0x225   :  { %2012 = vmatpush2.msra.mxu1 %v1937_v17 }
 0x226   :  { %2013 = vmatprep.subr.mxu1 %v1936_v42 }
 0x227   :  { %2014 = vmatpush2.msra.mxu1 %v1935_v36  ;;  %v1274_v2 = vpop.f32.mrf.mxu1 }
 0x228   :  { %2015 = vmatprep.subr.mxu1 %v1934_v4 }
 0x229   :  { %2016 = vmatpush2.msra.mxu1 %v1933_v39  ;;  %v1276_v38 = vpop.f32.mrf.mxu1 }
 0x22a   :  { %2017 = vmatprep.subr.mxu1 %v1932_v11 }
 0x22b   :  { %2018 = vmatpush2.msra.mxu1 %v1931_v14 }
 0x22c   :  { %2019 = vmatprep.subr.mxu1 %v1930_v1 }
 0x22d   :  { %2020 = vmatpush2.msra.mxu1 %v1929_v10 }
 0x22e   :  { %2021 = vmatprep.subr.mxu1 %v1928_v8 }
 0x22f   :  { %2022 = vmatpush2.msra.mxu1 %v1927_v13 }
 0x230   :  { %2023 = vmatprep.subr.mxu1 %v1926_v45 }
 0x231   :  { %2024 = vmatpush2.msra.mxu1 %v1925_v24 }
 0x232   :  { %2025 = vmatprep.subr.mxu1 %v1924_v19 }
 0x233   :  { %2026 = vmatpush2.msra.mxu1 %v1923_v9 }
 0x234   :  { %2027 = vmatprep.subr.mxu1 %v1922_v12  ;;  %v1280_v18 = vpop.f32.mrf.mxu1  ;;  %v1517_v48 = vpop.f32.mrf.mxu0 }
 0x235   :  { %2028 = vmatpush2.msra.mxu1 %v1921_v62 }
 0x236   :  { %v1282_v6 = vpop.f32.mrf.mxu1  ;;  %v1519_v23 = vpop.f32.mrf.mxu0 }
 0x242   :  { %v1286_v52 = vpop.f32.mrf.mxu1  ;;  %v1523_v40 = vpop.f32.mrf.mxu0 }
 0x244   :  { %v1288_v21 = vpop.f32.mrf.mxu1  ;;  %v1525_v55 = vpop.f32.mrf.mxu0 }
 0x250   :  { %v1292_v60 = vpop.f32.mrf.mxu1  ;;  %v1529_v44 = vpop.f32.mrf.mxu0 }
 0x252   :  { %v1294_v31 = vpop.f32.mrf.mxu1  ;;  %v1531_v63 = vpop.f32.mrf.mxu0 }
 0x25e   :  { %v1535_v35 = vpop.f32.mrf.mxu0 }
 0x260   :  { %v1537_v37 = vpop.f32.mrf.mxu0 }
 0x26e   :  { %v1363_v25 = vpop.f32.mrf.mxu1 }
 0x26f   :  { %v1364_v19 = vadd.f32 %v1363_v25, %v1274_v2 }
 0x270   :  { %v1365_v7 = vpop.f32.mrf.mxu1 }
 0x271   :  { %v1366_v13 = vadd.f32 %v1365_v7, %v1276_v38  ;;  %v1540_v53 = vadd.f32 %v1517_v48, %v1364_v19 }
 0x273   :  { %v1369_v16 = vpop.f32.mrf.mxu1  ;;  %v1541_v22 = vadd.f32 %v1519_v23, %v1366_v13  ;;  %v1953_v13 = vld [vmem:[%s5042_s6] sm:$0x3] }
 0x274   :  { %v1370_v45 = vadd.f32 %v1369_v16, %v1280_v18 }
 0x275   :  { %v1371_v0 = vpop.f32.mrf.mxu1 }
 0x276   :  { %v1372_v8 = vadd.f32 %v1371_v0, %v1282_v6  ;;  %v1542_v59 = vadd.f32 %v1523_v40, %v1370_v45  ;;  %v1958_v45 = vrot.slane %v1953_v13, %v1039_v5 }
 0x278   :  { %v1375_v17 = vpop.f32.mrf.mxu1  ;;  %v1543_v49 = vadd.f32 %v1525_v55, %v1372_v8  ;;  %v2038_v8 = vld [vmem:[%s5040_s7] sm:$0xff] }
 0x279   :  { %v1376_v47 = vadd.f32 %v1375_v17, %v1286_v52 }
 0x27a   :  { %v1377_v36 = vpop.f32.mrf.mxu1 }
 0x27b   :  { %v1378_v62 = vadd.f32 %v1377_v36, %v1288_v21  ;;  %v1544_v26 = vadd.f32 %v1529_v44, %v1376_v47  ;;  %v2057_v36 = vld [vmem:[%s5040_s7 + $0x98] sm:$0xff] }
 0x27c   :  { %2512 = vmatprep.subr.mxu0 %v2057_v36 }
 0x27d   :  { %v1381_v39 = vpop.f32.mrf.mxu1  ;;  %v1545_v29 = vadd.f32 %v1531_v63, %v1378_v62  ;;  %v2486_v63 = vld [vmem:[%s5041_s4] ss:$0 sm:$0xff] }
 0x27e   :  { %v1841_v42 = vpop.f32.mrf.mxu0  ;;  %v1382_v34 = vadd.f32 %v1381_v39, %v1292_v60  ;;  %v2056_v39 = vld [vmem:[%s5040_s7 + $0x90] sm:$0xff] }
 0x27f   :  { %v1383_v14 = vpop.f32.mrf.mxu1 }
 0x280   :  { %v1843_v4 = vpop.f32.mrf.mxu0  ;;  %v1384_v50 = vadd.f32 %v1383_v14, %v1294_v31  ;;  %v1546_v41 = vadd.f32 %v1535_v35, %v1382_v34  ;;  %v2055_v14 = vld [vmem:[%s5040_s7 + $0x88] sm:$0xff] }
 0x282   :  { %v1847_v11 = vpop.f32.mrf.mxu0  ;;  %v1547_v18 = vadd.f32 %v1537_v37, %v1384_v50 }
 0x284   :  { %v1849_v1 = vpop.f32.mrf.mxu0 }
 0x286   :  { %v1853_v9 = vpop.f32.mrf.mxu0 }
 0x288   :  { %v1855_v58 = vpop.f32.mrf.mxu0 }
 0x28a   :  { %v1859_v57 = vpop.f32.mrf.mxu0 }
 0x28c   :  { %v1861_v23 = vpop.f32.mrf.mxu0 }
 0x2b2   :  { %v1679_v10 = vpop.f32.mrf.mxu1 }
 0x2b3   :  { %v1702_v20 = vadd.f32 %v1679_v10, %v1540_v53  ;;  %v2054_v10 = vld [vmem:[%s5040_s7 + $0x80] sm:$0xff] }
 0x2b4   :  { %v1681_v24 = vpop.f32.mrf.mxu1 }
 0x2b5   :  { %v1703_v46 = vadd.f32 %v1681_v24, %v1541_v22  ;;  %v1864_v6 = vadd.f32 %v1841_v42, %v1702_v20  ;;  %v1962_v24 = vrot.slane %v1953_v13, %v1043_v27 }
 0x2b6   :  { %v1685_v12 = vpop.f32.mrf.mxu1 }
 0x2b7   :  { %v1704_v61 = vadd.f32 %v1685_v12, %v1542_v59  ;;  %v1865_v28 = vadd.f32 %v1843_v4, %v1703_v46  ;;  %v2041_v4 = vld [vmem:[%s5040_s7 + $0x18] sm:$0xff] }
 0x2b8   :  { %v1687_v15 = vpop.f32.mrf.mxu1  ;;  %2513 = vmatpush3.msra.mxu0 %v2041_v4 }
 0x2b9   :  { %v1705_v32 = vadd.f32 %v1687_v15, %v1543_v49  ;;  %v1866_v56 = vadd.f32 %v1847_v11, %v1704_v61  ;;  %v1872_v31 = vmax.f32 %v1864_v6, %v1865_v28  ;;  %2514 = vmatprep.subr.mxu0 %v2056_v39  ;;  %v2040_v11 = vld [vmem:[%s5040_s7 + $0x10] sm:$0xff]  ;;  %v2487_v15 = vld [vmem:[%s5043_s8] ss:$0 sm:$0xff] }
 0x2ba   :  { %v1691_v54 = vpop.f32.mrf.mxu1  ;;  %2515 = vmatpush3.msra.mxu0 %v2040_v11 }
 0x2bb   :  { %v1867_v3 = vadd.f32 %v1849_v1, %v1705_v32  ;;  %v1706_v2 = vadd.f32 %v1691_v54, %v1544_v26  ;;  %2516 = vmatprep.subr.mxu0 %v2055_v14  ;;  %v2039_v1 = vld [vmem:[%s5040_s7 + $0x8] sm:$0xff] }
 0x2bc   :  { %v1693_v43 = vpop.f32.mrf.mxu1  ;;  %2517 = vmatpush3.msra.mxu0 %v2039_v1 }
 0x2bd   :  { %v1707_v51 = vadd.f32 %v1693_v43, %v1545_v29  ;;  %v1873_v52 = vmax.f32 %v1866_v56, %v1867_v3  ;;  %v1868_v40 = vadd.f32 %v1853_v9, %v1706_v2  ;;  %2518 = vmatprep.subr.mxu0 %v2054_v10 }
 0x2be   :  { %v1697_v33 = vpop.f32.mrf.mxu1  ;;  %2519 = vmatpush3.msra.mxu0 %v2038_v8 }
 0x2bf   :  { %v1708_v38 = vadd.f32 %v1697_v33, %v1546_v41  ;;  %v1869_v48 = vadd.f32 %v1855_v58, %v1707_v51  ;;  %v1876_v7 = vmax.f32 %v1872_v31, %v1873_v52 }
 0x2c0   :  { %v1699_v21 = vpop.f32.mrf.mxu1 }
 0x2c1   :  { %v1709_v60 = vadd.f32 %v1699_v21, %v1547_v18  ;;  %v1870_v25 = vadd.f32 %v1859_v57, %v1708_v38  ;;  %v1874_v44 = vmax.f32 %v1868_v40, %v1869_v48  ;;  %v1885_v0 = vadd.f32 %v2486_v63, %v1876_v7 }
 0x2c3   :  { %v1871_v55 = vadd.f32 %v1861_v23, %v1709_v60  ;;  %v1887_v42 = vmax.f32 %v1885_v0, 0.0 }
 0x2c5   :  { %v1875_v16 = vmax.f32 %v1870_v25, %v1871_v55 }
 0x2c7   :  { %v1877_v35 = vmax.f32 %v1874_v44, %v1875_v16 }
 0x2c9   :  { %v1886_v37 = vadd.f32 %v2486_v63, %v1877_v35 }
 0x2cb   :  { %v1888_v17 = vmax.f32 %v1886_v37, 0.0 }
 0x2cd   :  { %2029 = vmatprep.mubr.f32.mxu1 %v1888_v17 }
 0x2ce   :  { %2030 = vmatmul.mubr.f32.vlgmr.msra.gmra.mxu1 %v1887_v42 }
 0x38e   :  { %v2031_v19 = vpop.f32.mrf.mxu1 }
 0x38f   :  { %v2032_v9 = vadd.f32 %v2031_v19, %v1958_v45 }
 0x390   :  { %v2033_v12 = vpop.f32.mrf.mxu1 }
 0x391   :  { %v2034_v62 = vadd.f32 %v2033_v12, %v1962_v24  ;;  %v2036_v22 = vmax.f32 %v2032_v9, 0.0 }
 0x393   :  { %v2037_v49 = vmax.f32 %v2034_v62, 0.0 }
 0x395   :  { %2141 = vmatprep.mubr.f32.mxu0 %v2037_v49 }
 0x396   :  { %2142 = vmatmul.mubr.f32.vlgmr.msra.gmra.mxu0 %v2036_v22 }
 0x456   :  { %v2520_v59 = vpop.f32.mrf.mxu0 }
 0x458   :  { %v2521_v47 = vpop.f32.mrf.mxu0 }
 0x459   :  { %v2522_v34 = vadd.f32 %v2521_v47, %v2520_v59 }
 0x45b   :  { %v2144_v32 = vadd.f32 %v2522_v34, %v2487_v15 }
 0x45d   :  { %2147 = vst [vmem:[%s5044_s9] sm:$0xff] %v2144_v32 }

</bundles_post_ra>
